<compile_context>
chip_gen: v7x
topology: tpu7x:2x2x1
jax: 0.10.0
libtpu: 0.0.40
codegen_flags: <defaults>
</compile_context>

<pallas_src>
import math

import jax
import jax.numpy as jnp
from jax.experimental import pallas as pl
from jax.experimental.pallas import tpu as pltpu

# ----------------------- config -----------------------
BATCH = 2
CODE_DIM = 128     # style latent dim (reference: 512)
CHANNEL = 128      # channels of the initial 4x4 block (reference: 512)
N_MLP = 8
SIZE = 4           # ConstantInput spatial size
HW = SIZE * SIZE
RGB_PAD = 128      # lane-dense padded to_rgb output width (first 3 lanes are real RGB)


# ----------------------- fused kernel -----------------------
def _styled_g_kernel(z_ref, nz_ref, const_ref,
                     mlp_w_ref, mlp_b_ref,
                     adain_w_ref, adain_b_ref,
                     n1w_ref, n2w_ref,
                     conv_w_ref, conv_b_ref,
                     rgb_w_ref, rgb_b_ref,
                     out_ref,
                     xpad_ref):
    """Entire Styled_G forward (step=0) in one kernel.

    z: (B, CODE) f32        nz: (B, HW, 1) f32        const: (1, HW, C) f32
    mlp_w: (N_MLP, CODE, CODE) bf16   mlp_b: (N_MLP, CODE) f32
    adain_w: (CODE, 4C) bf16          adain_b: (1, 4C) f32     (adain1 ++ adain2)
    n1w/n2w: (1, C) f32
    conv_w: (9*C, C) bf16             conv_b: (1, C) f32
    rgb_w: (C, 128) bf16 (padded)     rgb_b: (1, 128) f32
    out: (B, HW, 128) f32
    xpad (scratch): (B, SIZE+2, SIZE+2, C) f32
    """
    B = z_ref.shape[0]
    C = const_ref.shape[-1]
    H = W = SIZE

    # ---- style mapping: PixelWiseNormalisation + N_MLP x (EqualLinear + LeakyReLU(0.2)) ----
    w = z_ref[...].astype(jnp.float32)
    w = w * jax.lax.rsqrt(jnp.mean(w * w, axis=1, keepdims=True) + 1e-8)
    for i in range(mlp_w_ref.shape[0]):
        w = jnp.dot(w.astype(jnp.bfloat16), mlp_w_ref[i],
                    preferred_element_type=jnp.float32) + mlp_b_ref[pl.ds(i, 1), :]
        w = jnp.where(w >= 0, w, 0.2 * w)

    # ---- both AdaIN (gamma,beta) projections in one matmul: (B, 4C) ----
    st = jnp.dot(w.astype(jnp.bfloat16), adain_w_ref[...],
                 preferred_element_type=jnp.float32) + adain_b_ref[...]
    g1 = st[:, 0 * C:1 * C][:, None, :]
    b1 = st[:, 1 * C:2 * C][:, None, :]
    g2 = st[:, 2 * C:3 * C][:, None, :]
    b2 = st[:, 3 * C:4 * C][:, None, :]

    nz = nz_ref[...]                                        # (B, HW, 1)

    def noise_lrelu_adain(x, nw, gamma, beta):
        # NoiseInjection -> LeakyReLU(0.2) -> InstanceNorm2d(eps=1e-5) -> AdaIN
        x = x + nw[None, :, :] * nz                          # broadcasts to (B, HW, C)
        x = jnp.where(x >= 0, x, 0.2 * x)
        mu = jnp.mean(x, axis=1, keepdims=True)
        var = jnp.mean((x - mu) * (x - mu), axis=1, keepdims=True)
        xn = (x - mu) * jax.lax.rsqrt(var + 1e-5)
        return gamma * xn + beta

    # ---- block0 first half: ConstantInput -> noise1 -> lrelu1 -> adain1 ----
    x = noise_lrelu_adain(const_ref[...], n1w_ref[...], g1, b1)      # (B, HW, C)

    # ---- conv2: Equal 3x3 conv (padding=1) as one im2col matmul ----
    xpad_ref[...] = jnp.zeros_like(xpad_ref)
    xpad_ref[:, 1:1 + H, 1:1 + W, :] = x.reshape(B, H, W, C)
    pieces = []
    for kh in range(3):
        for kw in range(3):
            pieces.append(xpad_ref[:, kh:kh + H, kw:kw + W, :].reshape(B * H * W, C))
    patches = jnp.concatenate(pieces, axis=-1).astype(jnp.bfloat16)  # (B*HW, 9C)
    y = jnp.dot(patches, conv_w_ref[...],
                preferred_element_type=jnp.float32) + conv_b_ref[...]
    x = y.reshape(B, H * W, C)

    # ---- block0 second half: noise2 -> lrelu2 -> adain2 ----
    x = noise_lrelu_adain(x, n2w_ref[...], g2, b2)

    # ---- to_rgb[0]: Equal 1x1 conv, lane-dense padded output ----
    rgb = jnp.dot(x.reshape(B * H * W, C).astype(jnp.bfloat16), rgb_w_ref[...],
                  preferred_element_type=jnp.float32) + rgb_b_ref[...]
    out_ref[...] = rgb.reshape(B, H * W, RGB_PAD)


# ----------------------- parameters (deterministic, matches __init__ shapes) -----------------------
def init_params(key):
    ks = jax.random.split(key, 8)
    p = {}
    # style MLP: 8 x EqualLinear(CODE, CODE); torch weight [out,in] ~ N(0,1), bias 0,
    # equal-lr scale sqrt(2/fan_in), fan_in = in_dim. Pre-scale + transpose to [in,out]; bf16 store.
    w = jax.random.normal(ks[0], (N_MLP, CODE_DIM, CODE_DIM), jnp.float32)
    p['mlp_w'] = (jnp.transpose(w, (0, 2, 1)) * math.sqrt(2.0 / CODE_DIM)).astype(jnp.bfloat16)
    p['mlp_b'] = jnp.zeros((N_MLP, CODE_DIM), jnp.float32)

    # ConstantInput: randn(1, C, 4, 4) -> channel-last flat (1, HW, C)
    const = jax.random.normal(ks[1], (1, CHANNEL, SIZE, SIZE), jnp.float32)
    p['const'] = jnp.transpose(const, (0, 2, 3, 1)).reshape(1, HW, CHANNEL)

    # NoiseInjection weights: zeros(1, C, 1, 1) * sqrt(2/C) -> stays zero, stored as (1, C)
    p['noise1_w'] = jnp.zeros((1, CHANNEL), jnp.float32)
    p['noise2_w'] = jnp.zeros((1, CHANNEL), jnp.float32)

    # AdaIN EqualLinear(CODE, 2C): weight [2C, CODE] ~ N(0,1) * sqrt(2/CODE);
    # bias[:C]=1, bias[C:]=0 (bias NOT equal-lr scaled). Concatenate adain1 ++ adain2 -> (CODE, 4C).
    def adain(k):
        aw = jax.random.normal(k, (2 * CHANNEL, CODE_DIM), jnp.float32) * math.sqrt(2.0 / CODE_DIM)
        ab = jnp.concatenate([jnp.ones((CHANNEL,), jnp.float32),
                              jnp.zeros((CHANNEL,), jnp.float32)])
        return jnp.transpose(aw), ab
    a1w, a1b = adain(ks[2])
    a2w, a2b = adain(ks[3])
    p['adain_w'] = jnp.concatenate([a1w, a2w], axis=1).astype(jnp.bfloat16)     # (CODE, 4C)
    p['adain_b'] = jnp.concatenate([a1b, a2b]).reshape(1, 4 * CHANNEL)          # (1, 4C)

    # conv2: ConvLayerEqual(C, C, 3, padding=1): weight [Cout,Cin,3,3] ~ N(0,1) * sqrt(2/(Cin*9))
    # im2col layout: (kh, kw, Cin) -> rows, Cout -> cols.
    cw = jax.random.normal(ks[4], (CHANNEL, CHANNEL, 3, 3), jnp.float32) * math.sqrt(2.0 / (CHANNEL * 9))
    p['conv2_w'] = (jnp.transpose(cw, (2, 3, 1, 0))
                    .reshape(9 * CHANNEL, CHANNEL).astype(jnp.bfloat16))        # (9*Cin, Cout)
    p['conv2_b'] = jnp.zeros((1, CHANNEL), jnp.float32)

    # to_rgb[0]: ConvLayerEqual(C, 3, 1): weight [3, C, 1, 1] ~ N(0,1) * sqrt(2/C).
    # Zero-pad out-dim to 128 lanes for a lane-dense store; wrapper slices [:3].
    rw = jax.random.normal(ks[5], (3, CHANNEL, 1, 1), jnp.float32) * math.sqrt(2.0 / CHANNEL)
    rgbw = jnp.zeros((CHANNEL, RGB_PAD), jnp.float32).at[:, :3].set(jnp.transpose(rw[:, :, 0, 0]))
    p['torgb_w'] = rgbw.astype(jnp.bfloat16)                                    # (C, 128)
    p['torgb_b'] = jnp.zeros((1, RGB_PAD), jnp.float32)
    return p


# ----------------------- full forward (one pallas_call) -----------------------
@jax.jit
def styled_g_forward(params, z, noise0_nchw):
    """z: (B, CODE) latent; noise0: (B, 1, 4, 4) NCHW -> returns (B, 3, 4, 4) NCHW."""
    B = z.shape[0]
    H = W = SIZE
    # NCHW noise with 1 channel is row-major identical to (B, HW, 1) channel-last.
    noise = noise0_nchw.reshape(B, H * W, 1)
    rgb_padded = pl.pallas_call(
        _styled_g_kernel,
        out_shape=jax.ShapeDtypeStruct((B, H * W, RGB_PAD), jnp.float32),
        scratch_shapes=[pltpu.VMEM((B, SIZE + 2, SIZE + 2, CHANNEL), jnp.float32)],
    )(z, noise, params['const'],
      params['mlp_w'], params['mlp_b'],
      params['adain_w'], params['adain_b'],
      params['noise1_w'], params['noise2_w'],
      params['conv2_w'], params['conv2_b'],
      params['torgb_w'], params['torgb_b'])
    rgb = rgb_padded[..., :3].reshape(B, H, W, 3)
    return jnp.transpose(rgb, (0, 3, 1, 2))                                     # NCHW

# TODO(synk): StyledConvBlock variants for step>0 (nearest upsample / fused conv-transpose /
# Blur) are never reached by Styled_G.forward with default step=0, so they are not implemented.


if __name__ == "__main__":
    key = jax.random.PRNGKey(0)
    kp, kz, kn, kw1, kw2 = jax.random.split(key, 5)
    params = init_params(kp)
    z = jax.random.normal(kz, (BATCH, CODE_DIM), jnp.float32)
    noise0 = jax.random.normal(kn, (BATCH, 1, SIZE, SIZE), jnp.float32)

    out = styled_g_forward(params, z, noise0)
    jax.block_until_ready(out)
    assert out.shape == (BATCH, 3, SIZE, SIZE), out.shape
    assert bool(jnp.all(jnp.isfinite(out)))

    # Exercise the noise-injection broadcast with nonzero noise weights
    # (zero-init noise weights make the noise path a numerical no-op at init).
    params_nz = dict(params)
    params_nz['noise1_w'] = 0.1 * jax.random.normal(kw1, (1, CHANNEL), jnp.float32)
    params_nz['noise2_w'] = 0.1 * jax.random.normal(kw2, (1, CHANNEL), jnp.float32)
    out2 = styled_g_forward(params_nz, z, noise0)
    jax.block_until_ready(out2)
    assert out2.shape == (BATCH, 3, SIZE, SIZE), out2.shape
    assert bool(jnp.all(jnp.isfinite(out2)))

    print("KERNEL_OK")
</pallas_src>

<mosaic_0001>
module attributes {stable_mosaic.version = 11 : i64} {
  func.func @_styled_g_kernel(%arg0: memref<2x128xf32, #tpu.memory_space<vmem>>, %arg1: memref<2x16x1xf32, #tpu.memory_space<vmem>>, %arg2: memref<1x16x128xf32, #tpu.memory_space<vmem>>, %arg3: memref<8x128x128xbf16, #tpu.memory_space<vmem>>, %arg4: memref<8x128xf32, #tpu.memory_space<vmem>>, %arg5: memref<128x512xbf16, #tpu.memory_space<vmem>>, %arg6: memref<1x512xf32, #tpu.memory_space<vmem>>, %arg7: memref<1x128xf32, #tpu.memory_space<vmem>>, %arg8: memref<1x128xf32, #tpu.memory_space<vmem>>, %arg9: memref<1152x128xbf16, #tpu.memory_space<vmem>>, %arg10: memref<1x128xf32, #tpu.memory_space<vmem>>, %arg11: memref<128x128xbf16, #tpu.memory_space<vmem>>, %arg12: memref<1x128xf32, #tpu.memory_space<vmem>>, %arg13: memref<2x16x128xf32, #tpu.memory_space<vmem>>, %arg14: memref<2x6x6x128xf32, #tpu.memory_space<vmem>>) attributes {dimension_semantics = [], scalar_prefetch = 0 : i64, scratch_operands = 1 : i64, tpu.core_type = #tpu.core_type<tc>} {
    %c0 = arith.constant 0 : index
    %c0_0 = arith.constant 0 : index
    %0 = vector.load %arg0[%c0, %c0_0] : memref<2x128xf32, #tpu.memory_space<vmem>>, vector<2x128xf32>
    %1 = arith.mulf %0, %0 : vector<2x128xf32>
    %cst = arith.constant dense<0.000000e+00> : vector<2xf32>
    %2 = vector.multi_reduction <add>, %1, %cst [1] : vector<2x128xf32> to vector<2xf32>
    %3 = vector.shape_cast %2 : vector<2xf32> to vector<2x1xf32>
    %cst_1 = arith.constant 1.280000e+02 : f32
    %4 = vector.broadcast %cst_1 : f32 to vector<2x1xf32>
    %5 = arith.divf %3, %4 : vector<2x1xf32>
    %cst_2 = arith.constant 9.99999993E-9 : f32
    %6 = vector.broadcast %cst_2 : f32 to vector<2x1xf32>
    %7 = arith.addf %5, %6 : vector<2x1xf32>
    %8 = math.rsqrt %7 : vector<2x1xf32>
    %9 = vector.broadcast %8 : vector<2x1xf32> to vector<2x128xf32>
    %10 = arith.mulf %0, %9 : vector<2x128xf32>
    %11 = arith.truncf %10 : vector<2x128xf32> to vector<2x128xbf16>
    %c0_3 = arith.constant 0 : index
    %c0_4 = arith.constant 0 : index
    %c0_5 = arith.constant 0 : index
    %12 = vector.load %arg3[%c0_3, %c0_4, %c0_5] : memref<8x128x128xbf16, #tpu.memory_space<vmem>>, vector<1x128x128xbf16>
    %13 = vector.shape_cast %12 : vector<1x128x128xbf16> to vector<128x128xbf16>
    %cst_6 = arith.constant dense<0.000000e+00> : vector<2x128xf32>
    %14 = tpu.matmul %11, %13, %cst_6 {dimension_numbers = #tpu.dot_dimension_numbers<[1], [0], [0], [1], [0, 0, 1, 1], [], []>} : vector<2x128xbf16>, vector<128x128xbf16>, vector<2x128xf32> -> vector<2x128xf32>
    %c0_7 = arith.constant 0 : index
    %c0_8 = arith.constant 0 : index
    %15 = vector.load %arg4[%c0_7, %c0_8] : memref<8x128xf32, #tpu.memory_space<vmem>>, vector<1x128xf32>
    %16 = vector.broadcast %15 : vector<1x128xf32> to vector<2x128xf32>
    %17 = arith.addf %14, %16 : vector<2x128xf32>
    %cst_9 = arith.constant 0.000000e+00 : f32
    %18 = vector.broadcast %cst_9 : f32 to vector<2x128xf32>
    %19 = arith.cmpf oge, %17, %18 : vector<2x128xf32>
    %cst_10 = arith.constant 2.000000e-01 : f32
    %20 = vector.broadcast %cst_10 : f32 to vector<2x128xf32>
    %21 = arith.mulf %20, %17 : vector<2x128xf32>
    %22 = arith.select %19, %17, %21 : vector<2x128xi1>, vector<2x128xf32>
    %23 = arith.truncf %22 : vector<2x128xf32> to vector<2x128xbf16>
    %c1 = arith.constant 1 : index
    %c0_11 = arith.constant 0 : index
    %c0_12 = arith.constant 0 : index
    %24 = vector.load %arg3[%c1, %c0_11, %c0_12] : memref<8x128x128xbf16, #tpu.memory_space<vmem>>, vector<1x128x128xbf16>
    %25 = vector.shape_cast %24 : vector<1x128x128xbf16> to vector<128x128xbf16>
    %cst_13 = arith.constant dense<0.000000e+00> : vector<2x128xf32>
    %26 = tpu.matmul %23, %25, %cst_13 {dimension_numbers = #tpu.dot_dimension_numbers<[1], [0], [0], [1], [0, 0, 1, 1], [], []>} : vector<2x128xbf16>, vector<128x128xbf16>, vector<2x128xf32> -> vector<2x128xf32>
    %c1_14 = arith.constant 1 : index
    %c0_15 = arith.constant 0 : index
    %27 = vector.load %arg4[%c1_14, %c0_15] : memref<8x128xf32, #tpu.memory_space<vmem>>, vector<1x128xf32>
    %28 = vector.broadcast %27 : vector<1x128xf32> to vector<2x128xf32>
    %29 = arith.addf %26, %28 : vector<2x128xf32>
    %cst_16 = arith.constant 0.000000e+00 : f32
    %30 = vector.broadcast %cst_16 : f32 to vector<2x128xf32>
    %31 = arith.cmpf oge, %29, %30 : vector<2x128xf32>
    %cst_17 = arith.constant 2.000000e-01 : f32
    %32 = vector.broadcast %cst_17 : f32 to vector<2x128xf32>
    %33 = arith.mulf %32, %29 : vector<2x128xf32>
    %34 = arith.select %31, %29, %33 : vector<2x128xi1>, vector<2x128xf32>
    %35 = arith.truncf %34 : vector<2x128xf32> to vector<2x128xbf16>
    %c2 = arith.constant 2 : index
    %c0_18 = arith.constant 0 : index
    %c0_19 = arith.constant 0 : index
    %36 = vector.load %arg3[%c2, %c0_18, %c0_19] : memref<8x128x128xbf16, #tpu.memory_space<vmem>>, vector<1x128x128xbf16>
    %37 = vector.shape_cast %36 : vector<1x128x128xbf16> to vector<128x128xbf16>
    %cst_20 = arith.constant dense<0.000000e+00> : vector<2x128xf32>
    %38 = tpu.matmul %35, %37, %cst_20 {dimension_numbers = #tpu.dot_dimension_numbers<[1], [0], [0], [1], [0, 0, 1, 1], [], []>} : vector<2x128xbf16>, vector<128x128xbf16>, vector<2x128xf32> -> vector<2x128xf32>
    %c2_21 = arith.constant 2 : index
    %c0_22 = arith.constant 0 : index
    %39 = vector.load %arg4[%c2_21, %c0_22] : memref<8x128xf32, #tpu.memory_space<vmem>>, vector<1x128xf32>
    %40 = vector.broadcast %39 : vector<1x128xf32> to vector<2x128xf32>
    %41 = arith.addf %38, %40 : vector<2x128xf32>
    %cst_23 = arith.constant 0.000000e+00 : f32
    %42 = vector.broadcast %cst_23 : f32 to vector<2x128xf32>
    %43 = arith.cmpf oge, %41, %42 : vector<2x128xf32>
    %cst_24 = arith.constant 2.000000e-01 : f32
    %44 = vector.broadcast %cst_24 : f32 to vector<2x128xf32>
    %45 = arith.mulf %44, %41 : vector<2x128xf32>
    %46 = arith.select %43, %41, %45 : vector<2x128xi1>, vector<2x128xf32>
    %47 = arith.truncf %46 : vector<2x128xf32> to vector<2x128xbf16>
    %c3 = arith.constant 3 : index
    %c0_25 = arith.constant 0 : index
    %c0_26 = arith.constant 0 : index
    %48 = vector.load %arg3[%c3, %c0_25, %c0_26] : memref<8x128x128xbf16, #tpu.memory_space<vmem>>, vector<1x128x128xbf16>
    %49 = vector.shape_cast %48 : vector<1x128x128xbf16> to vector<128x128xbf16>
    %cst_27 = arith.constant dense<0.000000e+00> : vector<2x128xf32>
    %50 = tpu.matmul %47, %49, %cst_27 {dimension_numbers = #tpu.dot_dimension_numbers<[1], [0], [0], [1], [0, 0, 1, 1], [], []>} : vector<2x128xbf16>, vector<128x128xbf16>, vector<2x128xf32> -> vector<2x128xf32>
    %c3_28 = arith.constant 3 : index
    %c0_29 = arith.constant 0 : index
    %51 = vector.load %arg4[%c3_28, %c0_29] : memref<8x128xf32, #tpu.memory_space<vmem>>, vector<1x128xf32>
    %52 = vector.broadcast %51 : vector<1x128xf32> to vector<2x128xf32>
    %53 = arith.addf %50, %52 : vector<2x128xf32>
    %cst_30 = arith.constant 0.000000e+00 : f32
    %54 = vector.broadcast %cst_30 : f32 to vector<2x128xf32>
    %55 = arith.cmpf oge, %53, %54 : vector<2x128xf32>
    %cst_31 = arith.constant 2.000000e-01 : f32
    %56 = vector.broadcast %cst_31 : f32 to vector<2x128xf32>
    %57 = arith.mulf %56, %53 : vector<2x128xf32>
    %58 = arith.select %55, %53, %57 : vector<2x128xi1>, vector<2x128xf32>
    %59 = arith.truncf %58 : vector<2x128xf32> to vector<2x128xbf16>
    %c4 = arith.constant 4 : index
    %c0_32 = arith.constant 0 : index
    %c0_33 = arith.constant 0 : index
    %60 = vector.load %arg3[%c4, %c0_32, %c0_33] : memref<8x128x128xbf16, #tpu.memory_space<vmem>>, vector<1x128x128xbf16>
    %61 = vector.shape_cast %60 : vector<1x128x128xbf16> to vector<128x128xbf16>
    %cst_34 = arith.constant dense<0.000000e+00> : vector<2x128xf32>
    %62 = tpu.matmul %59, %61, %cst_34 {dimension_numbers = #tpu.dot_dimension_numbers<[1], [0], [0], [1], [0, 0, 1, 1], [], []>} : vector<2x128xbf16>, vector<128x128xbf16>, vector<2x128xf32> -> vector<2x128xf32>
    %c4_35 = arith.constant 4 : index
    %c0_36 = arith.constant 0 : index
    %63 = vector.load %arg4[%c4_35, %c0_36] : memref<8x128xf32, #tpu.memory_space<vmem>>, vector<1x128xf32>
    %64 = vector.broadcast %63 : vector<1x128xf32> to vector<2x128xf32>
    %65 = arith.addf %62, %64 : vector<2x128xf32>
    %cst_37 = arith.constant 0.000000e+00 : f32
    %66 = vector.broadcast %cst_37 : f32 to vector<2x128xf32>
    %67 = arith.cmpf oge, %65, %66 : vector<2x128xf32>
    %cst_38 = arith.constant 2.000000e-01 : f32
    %68 = vector.broadcast %cst_38 : f32 to vector<2x128xf32>
    %69 = arith.mulf %68, %65 : vector<2x128xf32>
    %70 = arith.select %67, %65, %69 : vector<2x128xi1>, vector<2x128xf32>
    %71 = arith.truncf %70 : vector<2x128xf32> to vector<2x128xbf16>
    %c5 = arith.constant 5 : index
    %c0_39 = arith.constant 0 : index
    %c0_40 = arith.constant 0 : index
    %72 = vector.load %arg3[%c5, %c0_39, %c0_40] : memref<8x128x128xbf16, #tpu.memory_space<vmem>>, vector<1x128x128xbf16>
    %73 = vector.shape_cast %72 : vector<1x128x128xbf16> to vector<128x128xbf16>
    %cst_41 = arith.constant dense<0.000000e+00> : vector<2x128xf32>
    %74 = tpu.matmul %71, %73, %cst_41 {dimension_numbers = #tpu.dot_dimension_numbers<[1], [0], [0], [1], [0, 0, 1, 1], [], []>} : vector<2x128xbf16>, vector<128x128xbf16>, vector<2x128xf32> -> vector<2x128xf32>
    %c5_42 = arith.constant 5 : index
    %c0_43 = arith.constant 0 : index
    %75 = vector.load %arg4[%c5_42, %c0_43] : memref<8x128xf32, #tpu.memory_space<vmem>>, vector<1x128xf32>
    %76 = vector.broadcast %75 : vector<1x128xf32> to vector<2x128xf32>
    %77 = arith.addf %74, %76 : vector<2x128xf32>
    %cst_44 = arith.constant 0.000000e+00 : f32
    %78 = vector.broadcast %cst_44 : f32 to vector<2x128xf32>
    %79 = arith.cmpf oge, %77, %78 : vector<2x128xf32>
    %cst_45 = arith.constant 2.000000e-01 : f32
    %80 = vector.broadcast %cst_45 : f32 to vector<2x128xf32>
    %81 = arith.mulf %80, %77 : vector<2x128xf32>
    %82 = arith.select %79, %77, %81 : vector<2x128xi1>, vector<2x128xf32>
    %83 = arith.truncf %82 : vector<2x128xf32> to vector<2x128xbf16>
    %c6 = arith.constant 6 : index
    %c0_46 = arith.constant 0 : index
    %c0_47 = arith.constant 0 : index
    %84 = vector.load %arg3[%c6, %c0_46, %c0_47] : memref<8x128x128xbf16, #tpu.memory_space<vmem>>, vector<1x128x128xbf16>
    %85 = vector.shape_cast %84 : vector<1x128x128xbf16> to vector<128x128xbf16>
    %cst_48 = arith.constant dense<0.000000e+00> : vector<2x128xf32>
    %86 = tpu.matmul %83, %85, %cst_48 {dimension_numbers = #tpu.dot_dimension_numbers<[1], [0], [0], [1], [0, 0, 1, 1], [], []>} : vector<2x128xbf16>, vector<128x128xbf16>, vector<2x128xf32> -> vector<2x128xf32>
    %c6_49 = arith.constant 6 : index
    %c0_50 = arith.constant 0 : index
    %87 = vector.load %arg4[%c6_49, %c0_50] : memref<8x128xf32, #tpu.memory_space<vmem>>, vector<1x128xf32>
    %88 = vector.broadcast %87 : vector<1x128xf32> to vector<2x128xf32>
    %89 = arith.addf %86, %88 : vector<2x128xf32>
    %cst_51 = arith.constant 0.000000e+00 : f32
    %90 = vector.broadcast %cst_51 : f32 to vector<2x128xf32>
    %91 = arith.cmpf oge, %89, %90 : vector<2x128xf32>
    %cst_52 = arith.constant 2.000000e-01 : f32
    %92 = vector.broadcast %cst_52 : f32 to vector<2x128xf32>
    %93 = arith.mulf %92, %89 : vector<2x128xf32>
    %94 = arith.select %91, %89, %93 : vector<2x128xi1>, vector<2x128xf32>
    %95 = arith.truncf %94 : vector<2x128xf32> to vector<2x128xbf16>
    %c7 = arith.constant 7 : index
    %c0_53 = arith.constant 0 : index
    %c0_54 = arith.constant 0 : index
    %96 = vector.load %arg3[%c7, %c0_53, %c0_54] : memref<8x128x128xbf16, #tpu.memory_space<vmem>>, vector<1x128x128xbf16>
    %97 = vector.shape_cast %96 : vector<1x128x128xbf16> to vector<128x128xbf16>
    %cst_55 = arith.constant dense<0.000000e+00> : vector<2x128xf32>
    %98 = tpu.matmul %95, %97, %cst_55 {dimension_numbers = #tpu.dot_dimension_numbers<[1], [0], [0], [1], [0, 0, 1, 1], [], []>} : vector<2x128xbf16>, vector<128x128xbf16>, vector<2x128xf32> -> vector<2x128xf32>
    %c7_56 = arith.constant 7 : index
    %c0_57 = arith.constant 0 : index
    %99 = vector.load %arg4[%c7_56, %c0_57] : memref<8x128xf32, #tpu.memory_space<vmem>>, vector<1x128xf32>
    %100 = vector.broadcast %99 : vector<1x128xf32> to vector<2x128xf32>
    %101 = arith.addf %98, %100 : vector<2x128xf32>
    %cst_58 = arith.constant 0.000000e+00 : f32
    %102 = vector.broadcast %cst_58 : f32 to vector<2x128xf32>
    %103 = arith.cmpf oge, %101, %102 : vector<2x128xf32>
    %cst_59 = arith.constant 2.000000e-01 : f32
    %104 = vector.broadcast %cst_59 : f32 to vector<2x128xf32>
    %105 = arith.mulf %104, %101 : vector<2x128xf32>
    %106 = arith.select %103, %101, %105 : vector<2x128xi1>, vector<2x128xf32>
    %107 = arith.truncf %106 : vector<2x128xf32> to vector<2x128xbf16>
    %c0_60 = arith.constant 0 : index
    %c0_61 = arith.constant 0 : index
    %108 = vector.load %arg5[%c0_60, %c0_61] : memref<128x512xbf16, #tpu.memory_space<vmem>>, vector<128x512xbf16>
    %cst_62 = arith.constant dense<0.000000e+00> : vector<2x512xf32>
    %109 = tpu.matmul %107, %108, %cst_62 {dimension_numbers = #tpu.dot_dimension_numbers<[1], [0], [0], [1], [0, 0, 1, 1], [], []>} : vector<2x128xbf16>, vector<128x512xbf16>, vector<2x512xf32> -> vector<2x512xf32>
    %c0_63 = arith.constant 0 : index
    %c0_64 = arith.constant 0 : index
    %110 = vector.load %arg6[%c0_63, %c0_64] : memref<1x512xf32, #tpu.memory_space<vmem>>, vector<1x512xf32>
    %111 = vector.broadcast %110 : vector<1x512xf32> to vector<2x512xf32>
    %112 = arith.addf %109, %111 : vector<2x512xf32>
    %113 = vector.extract_strided_slice %112 {offsets = [0, 0], sizes = [2, 128], strides = [1, 1]} : vector<2x512xf32> to vector<2x128xf32>
    %114 = vector.shape_cast %113 : vector<2x128xf32> to vector<2x1x128xf32>
    %115 = vector.extract_strided_slice %112 {offsets = [0, 128], sizes = [2, 128], strides = [1, 1]} : vector<2x512xf32> to vector<2x128xf32>
    %116 = vector.shape_cast %115 : vector<2x128xf32> to vector<2x1x128xf32>
    %117 = vector.extract_strided_slice %112 {offsets = [0, 256], sizes = [2, 128], strides = [1, 1]} : vector<2x512xf32> to vector<2x128xf32>
    %118 = vector.shape_cast %117 : vector<2x128xf32> to vector<2x1x128xf32>
    %119 = vector.extract_strided_slice %112 {offsets = [0, 384], sizes = [2, 128], strides = [1, 1]} : vector<2x512xf32> to vector<2x128xf32>
    %120 = vector.shape_cast %119 : vector<2x128xf32> to vector<2x1x128xf32>
    %c0_65 = arith.constant 0 : index
    %c0_66 = arith.constant 0 : index
    %c0_67 = arith.constant 0 : index
    %121 = vector.load %arg1[%c0_65, %c0_66, %c0_67] : memref<2x16x1xf32, #tpu.memory_space<vmem>>, vector<2x16x1xf32>
    %c0_68 = arith.constant 0 : index
    %c0_69 = arith.constant 0 : index
    %c0_70 = arith.constant 0 : index
    %122 = vector.load %arg2[%c0_68, %c0_69, %c0_70] : memref<1x16x128xf32, #tpu.memory_space<vmem>>, vector<1x16x128xf32>
    %c0_71 = arith.constant 0 : index
    %c0_72 = arith.constant 0 : index
    %123 = vector.load %arg7[%c0_71, %c0_72] : memref<1x128xf32, #tpu.memory_space<vmem>>, vector<1x128xf32>
    %124 = vector.shape_cast %123 : vector<1x128xf32> to vector<1x1x128xf32>
    %125 = vector.broadcast %124 : vector<1x1x128xf32> to vector<2x16x128xf32>
    %126 = vector.broadcast %121 : vector<2x16x1xf32> to vector<2x16x128xf32>
    %127 = arith.mulf %125, %126 : vector<2x16x128xf32>
    %128 = vector.broadcast %122 : vector<1x16x128xf32> to vector<2x16x128xf32>
    %129 = arith.addf %128, %127 : vector<2x16x128xf32>
    %cst_73 = arith.constant 0.000000e+00 : f32
    %130 = vector.broadcast %cst_73 : f32 to vector<2x16x128xf32>
    %131 = arith.cmpf oge, %129, %130 : vector<2x16x128xf32>
    %cst_74 = arith.constant 2.000000e-01 : f32
    %132 = vector.broadcast %cst_74 : f32 to vector<2x16x128xf32>
    %133 = arith.mulf %132, %129 : vector<2x16x128xf32>
    %134 = arith.select %131, %129, %133 : vector<2x16x128xi1>, vector<2x16x128xf32>
    %cst_75 = arith.constant dense<0.000000e+00> : vector<2x128xf32>
    %135 = vector.multi_reduction <add>, %134, %cst_75 [1] : vector<2x16x128xf32> to vector<2x128xf32>
    %136 = vector.shape_cast %135 : vector<2x128xf32> to vector<2x1x128xf32>
    %cst_76 = arith.constant 1.600000e+01 : f32
    %137 = vector.broadcast %cst_76 : f32 to vector<2x1x128xf32>
    %138 = arith.divf %136, %137 : vector<2x1x128xf32>
    %139 = vector.broadcast %138 : vector<2x1x128xf32> to vector<2x16x128xf32>
    %140 = arith.subf %134, %139 : vector<2x16x128xf32>
    %141 = vector.broadcast %138 : vector<2x1x128xf32> to vector<2x16x128xf32>
    %142 = arith.subf %134, %141 : vector<2x16x128xf32>
    %143 = arith.mulf %140, %142 : vector<2x16x128xf32>
    %cst_77 = arith.constant dense<0.000000e+00> : vector<2x128xf32>
    %144 = vector.multi_reduction <add>, %143, %cst_77 [1] : vector<2x16x128xf32> to vector<2x128xf32>
    %145 = vector.shape_cast %144 : vector<2x128xf32> to vector<2x1x128xf32>
    %cst_78 = arith.constant 1.600000e+01 : f32
    %146 = vector.broadcast %cst_78 : f32 to vector<2x1x128xf32>
    %147 = arith.divf %145, %146 : vector<2x1x128xf32>
    %148 = vector.broadcast %138 : vector<2x1x128xf32> to vector<2x16x128xf32>
    %149 = arith.subf %134, %148 : vector<2x16x128xf32>
    %cst_79 = arith.constant 9.99999974E-6 : f32
    %150 = vector.broadcast %cst_79 : f32 to vector<2x1x128xf32>
    %151 = arith.addf %147, %150 : vector<2x1x128xf32>
    %152 = math.rsqrt %151 : vector<2x1x128xf32>
    %153 = vector.broadcast %152 : vector<2x1x128xf32> to vector<2x16x128xf32>
    %154 = arith.mulf %149, %153 : vector<2x16x128xf32>
    %155 = vector.broadcast %114 : vector<2x1x128xf32> to vector<2x16x128xf32>
    %156 = arith.mulf %155, %154 : vector<2x16x128xf32>
    %157 = vector.broadcast %116 : vector<2x1x128xf32> to vector<2x16x128xf32>
    %158 = arith.addf %156, %157 : vector<2x16x128xf32>
    %cst_80 = arith.constant 0.000000e+00 : f32
    %159 = vector.broadcast %cst_80 : f32 to vector<2x6x6x128xf32>
    %c0_81 = arith.constant 0 : index
    %c0_82 = arith.constant 0 : index
    %c0_83 = arith.constant 0 : index
    %c0_84 = arith.constant 0 : index
    %160 = vector.load %arg14[%c0_81, %c0_82, %c0_83, %c0_84] : memref<2x6x6x128xf32, #tpu.memory_space<vmem>>, vector<2x6x6x128xf32>
    tpu.vector_store %arg14[%c0_81, %c0_82, %c0_83, %c0_84], %159 {strides = array<i32>} : memref<2x6x6x128xf32, #tpu.memory_space<vmem>>, vector<2x6x6x128xf32>,
    %161 = vector.shape_cast %158 : vector<2x16x128xf32> to vector<2x4x4x128xf32>
    %c0_85 = arith.constant 0 : index
    %c1_86 = arith.constant 1 : index
    %c1_87 = arith.constant 1 : index
    %c0_88 = arith.constant 0 : index
    %162 = vector.load %arg14[%c0_85, %c1_86, %c1_87, %c0_88] : memref<2x6x6x128xf32, #tpu.memory_space<vmem>>, vector<2x4x4x128xf32>
    tpu.vector_store %arg14[%c0_85, %c1_86, %c1_87, %c0_88], %161 {strides = array<i32>} : memref<2x6x6x128xf32, #tpu.memory_space<vmem>>, vector<2x4x4x128xf32>,
    %c0_89 = arith.constant 0 : index
    %c0_90 = arith.constant 0 : index
    %c0_91 = arith.constant 0 : index
    %c0_92 = arith.constant 0 : index
    %163 = vector.load %arg14[%c0_89, %c0_90, %c0_91, %c0_92] : memref<2x6x6x128xf32, #tpu.memory_space<vmem>>, vector<2x4x4x128xf32>
    %164 = vector.shape_cast %163 : vector<2x4x4x128xf32> to vector<32x128xf32>
    %c0_93 = arith.constant 0 : index
    %c0_94 = arith.constant 0 : index
    %c1_95 = arith.constant 1 : index
    %c0_96 = arith.constant 0 : index
    %165 = vector.load %arg14[%c0_93, %c0_94, %c1_95, %c0_96] : memref<2x6x6x128xf32, #tpu.memory_space<vmem>>, vector<2x4x4x128xf32>
    %166 = vector.shape_cast %165 : vector<2x4x4x128xf32> to vector<32x128xf32>
    %c0_97 = arith.constant 0 : index
    %c0_98 = arith.constant 0 : index
    %c2_99 = arith.constant 2 : index
    %c0_100 = arith.constant 0 : index
    %167 = vector.load %arg14[%c0_97, %c0_98, %c2_99, %c0_100] : memref<2x6x6x128xf32, #tpu.memory_space<vmem>>, vector<2x4x4x128xf32>
    %168 = vector.shape_cast %167 : vector<2x4x4x128xf32> to vector<32x128xf32>
    %c0_101 = arith.constant 0 : index
    %c1_102 = arith.constant 1 : index
    %c0_103 = arith.constant 0 : index
    %c0_104 = arith.constant 0 : index
    %169 = vector.load %arg14[%c0_101, %c1_102, %c0_103, %c0_104] : memref<2x6x6x128xf32, #tpu.memory_space<vmem>>, vector<2x4x4x128xf32>
    %170 = vector.shape_cast %169 : vector<2x4x4x128xf32> to vector<32x128xf32>
    %c0_105 = arith.constant 0 : index
    %c1_106 = arith.constant 1 : index
    %c1_107 = arith.constant 1 : index
    %c0_108 = arith.constant 0 : index
    %171 = vector.load %arg14[%c0_105, %c1_106, %c1_107, %c0_108] : memref<2x6x6x128xf32, #tpu.memory_space<vmem>>, vector<2x4x4x128xf32>
    %172 = vector.shape_cast %171 : vector<2x4x4x128xf32> to vector<32x128xf32>
    %c0_109 = arith.constant 0 : index
    %c1_110 = arith.constant 1 : index
    %c2_111 = arith.constant 2 : index
    %c0_112 = arith.constant 0 : index
    %173 = vector.load %arg14[%c0_109, %c1_110, %c2_111, %c0_112] : memref<2x6x6x128xf32, #tpu.memory_space<vmem>>, vector<2x4x4x128xf32>
    %174 = vector.shape_cast %173 : vector<2x4x4x128xf32> to vector<32x128xf32>
    %c0_113 = arith.constant 0 : index
    %c2_114 = arith.constant 2 : index
    %c0_115 = arith.constant 0 : index
    %c0_116 = arith.constant 0 : index
    %175 = vector.load %arg14[%c0_113, %c2_114, %c0_115, %c0_116] : memref<2x6x6x128xf32, #tpu.memory_space<vmem>>, vector<2x4x4x128xf32>
    %176 = vector.shape_cast %175 : vector<2x4x4x128xf32> to vector<32x128xf32>
    %c0_117 = arith.constant 0 : index
    %c2_118 = arith.constant 2 : index
    %c1_119 = arith.constant 1 : index
    %c0_120 = arith.constant 0 : index
    %177 = vector.load %arg14[%c0_117, %c2_118, %c1_119, %c0_120] : memref<2x6x6x128xf32, #tpu.memory_space<vmem>>, vector<2x4x4x128xf32>
    %178 = vector.shape_cast %177 : vector<2x4x4x128xf32> to vector<32x128xf32>
    %c0_121 = arith.constant 0 : index
    %c2_122 = arith.constant 2 : index
    %c2_123 = arith.constant 2 : index
    %c0_124 = arith.constant 0 : index
    %179 = vector.load %arg14[%c0_121, %c2_122, %c2_123, %c0_124] : memref<2x6x6x128xf32, #tpu.memory_space<vmem>>, vector<2x4x4x128xf32>
    %180 = vector.shape_cast %179 : vector<2x4x4x128xf32> to vector<32x128xf32>
    %181 = tpu.concatenate %164, %166, %168, %170, %172, %174, %176, %178, %180 in 1 : vector<32x128xf32>, vector<32x128xf32>, vector<32x128xf32>, vector<32x128xf32>, vector<32x128xf32>, vector<32x128xf32>, vector<32x128xf32>, vector<32x128xf32>, vector<32x128xf32> -> vector<32x1152xf32>
    %182 = arith.truncf %181 : vector<32x1152xf32> to vector<32x1152xbf16>
    %c0_125 = arith.constant 0 : index
    %c0_126 = arith.constant 0 : index
    %183 = vector.load %arg9[%c0_125, %c0_126] : memref<1152x128xbf16, #tpu.memory_space<vmem>>, vector<1152x128xbf16>
    %cst_127 = arith.constant dense<0.000000e+00> : vector<32x128xf32>
    %184 = tpu.matmul %182, %183, %cst_127 {dimension_numbers = #tpu.dot_dimension_numbers<[1], [0], [0], [1], [0, 0, 1, 1], [], []>} : vector<32x1152xbf16>, vector<1152x128xbf16>, vector<32x128xf32> -> vector<32x128xf32>
    %c0_128 = arith.constant 0 : index
    %c0_129 = arith.constant 0 : index
    %185 = vector.load %arg10[%c0_128, %c0_129] : memref<1x128xf32, #tpu.memory_space<vmem>>, vector<1x128xf32>
    %186 = vector.broadcast %185 : vector<1x128xf32> to vector<32x128xf32>
    %187 = arith.addf %184, %186 : vector<32x128xf32>
    %188 = vector.shape_cast %187 : vector<32x128xf32> to vector<2x16x128xf32>
    %c0_130 = arith.constant 0 : index
    %c0_131 = arith.constant 0 : index
    %189 = vector.load %arg8[%c0_130, %c0_131] : memref<1x128xf32, #tpu.memory_space<vmem>>, vector<1x128xf32>
    %190 = vector.shape_cast %189 : vector<1x128xf32> to vector<1x1x128xf32>
    %191 = vector.broadcast %190 : vector<1x1x128xf32> to vector<2x16x128xf32>
    %192 = vector.broadcast %121 : vector<2x16x1xf32> to vector<2x16x128xf32>
    %193 = arith.mulf %191, %192 : vector<2x16x128xf32>
    %194 = arith.addf %188, %193 : vector<2x16x128xf32>
    %cst_132 = arith.constant 0.000000e+00 : f32
    %195 = vector.broadcast %cst_132 : f32 to vector<2x16x128xf32>
    %196 = arith.cmpf oge, %194, %195 : vector<2x16x128xf32>
    %cst_133 = arith.constant 2.000000e-01 : f32
    %197 = vector.broadcast %cst_133 : f32 to vector<2x16x128xf32>
    %198 = arith.mulf %197, %194 : vector<2x16x128xf32>
    %199 = arith.select %196, %194, %198 : vector<2x16x128xi1>, vector<2x16x128xf32>
    %cst_134 = arith.constant dense<0.000000e+00> : vector<2x128xf32>
    %200 = vector.multi_reduction <add>, %199, %cst_134 [1] : vector<2x16x128xf32> to vector<2x128xf32>
    %201 = vector.shape_cast %200 : vector<2x128xf32> to vector<2x1x128xf32>
    %cst_135 = arith.constant 1.600000e+01 : f32
    %202 = vector.broadcast %cst_135 : f32 to vector<2x1x128xf32>
    %203 = arith.divf %201, %202 : vector<2x1x128xf32>
    %204 = vector.broadcast %203 : vector<2x1x128xf32> to vector<2x16x128xf32>
    %205 = arith.subf %199, %204 : vector<2x16x128xf32>
    %206 = vector.broadcast %203 : vector<2x1x128xf32> to vector<2x16x128xf32>
    %207 = arith.subf %199, %206 : vector<2x16x128xf32>
    %208 = arith.mulf %205, %207 : vector<2x16x128xf32>
    %cst_136 = arith.constant dense<0.000000e+00> : vector<2x128xf32>
    %209 = vector.multi_reduction <add>, %208, %cst_136 [1] : vector<2x16x128xf32> to vector<2x128xf32>
    %210 = vector.shape_cast %209 : vector<2x128xf32> to vector<2x1x128xf32>
    %cst_137 = arith.constant 1.600000e+01 : f32
    %211 = vector.broadcast %cst_137 : f32 to vector<2x1x128xf32>
    %212 = arith.divf %210, %211 : vector<2x1x128xf32>
    %213 = vector.broadcast %203 : vector<2x1x128xf32> to vector<2x16x128xf32>
    %214 = arith.subf %199, %213 : vector<2x16x128xf32>
    %cst_138 = arith.constant 9.99999974E-6 : f32
    %215 = vector.broadcast %cst_138 : f32 to vector<2x1x128xf32>
    %216 = arith.addf %212, %215 : vector<2x1x128xf32>
    %217 = math.rsqrt %216 : vector<2x1x128xf32>
    %218 = vector.broadcast %217 : vector<2x1x128xf32> to vector<2x16x128xf32>
    %219 = arith.mulf %214, %218 : vector<2x16x128xf32>
    %220 = vector.broadcast %118 : vector<2x1x128xf32> to vector<2x16x128xf32>
    %221 = arith.mulf %220, %219 : vector<2x16x128xf32>
    %222 = vector.broadcast %120 : vector<2x1x128xf32> to vector<2x16x128xf32>
    %223 = arith.addf %221, %222 : vector<2x16x128xf32>
    %224 = vector.shape_cast %223 : vector<2x16x128xf32> to vector<32x128xf32>
    %225 = arith.truncf %224 : vector<32x128xf32> to vector<32x128xbf16>
    %c0_139 = arith.constant 0 : index
    %c0_140 = arith.constant 0 : index
    %226 = vector.load %arg11[%c0_139, %c0_140] : memref<128x128xbf16, #tpu.memory_space<vmem>>, vector<128x128xbf16>
    %cst_141 = arith.constant dense<0.000000e+00> : vector<32x128xf32>
    %227 = tpu.matmul %225, %226, %cst_141 {dimension_numbers = #tpu.dot_dimension_numbers<[1], [0], [0], [1], [0, 0, 1, 1], [], []>} : vector<32x128xbf16>, vector<128x128xbf16>, vector<32x128xf32> -> vector<32x128xf32>
    %c0_142 = arith.constant 0 : index
    %c0_143 = arith.constant 0 : index
    %228 = vector.load %arg12[%c0_142, %c0_143] : memref<1x128xf32, #tpu.memory_space<vmem>>, vector<1x128xf32>
    %229 = vector.broadcast %228 : vector<1x128xf32> to vector<32x128xf32>
    %230 = arith.addf %227, %229 : vector<32x128xf32>
    %231 = vector.shape_cast %230 : vector<32x128xf32> to vector<2x16x128xf32>
    %c0_144 = arith.constant 0 : index
    %c0_145 = arith.constant 0 : index
    %c0_146 = arith.constant 0 : index
    %232 = vector.load %arg13[%c0_144, %c0_145, %c0_146] : memref<2x16x128xf32, #tpu.memory_space<vmem>>, vector<2x16x128xf32>
    tpu.vector_store %arg13[%c0_144, %c0_145, %c0_146], %231 {strides = array<i32>} : memref<2x16x128xf32, #tpu.memory_space<vmem>>, vector<2x16x128xf32>,
    return
  }
}

</mosaic_0001>

<bundles_post_ra>
// kernel: styled_g_forward.1
= control target key start
LH: loop header
LB: loop body
LE: loop exit
PB: predicated region body
PF: predicated region fallthrough
CT: control target
= control target key end

     0   :  { %18 = vsyncpa [#allocation4], 0  ;;  %s4453_s0 = inlined_call_operand.hbm [shape: f32[2,128], index: 0, kind: input, shape index: {}]   ;;  %s4454_s1 = inlined_call_operand.vmem [shape: f32[2,16,1], index: 1, kind: input, shape index: {}]   ;;  %s4455_s2 = inlined_call_operand.hbm [shape: f32[1,16,128], index: 2, kind: input, shape index: {}]   ;;  %s4456_s3 = inlined_call_operand.hbm [shape: bf16[8,128,128], index: 3, kind: input, shape index: {}]   ;;  %s4457_s4 = inlined_call_operand.vmem [shape: f32[8,128], index: 4, kind: input, shape index: {}]   ;;  %s4458_s5 = inlined_call_operand.hbm [shape: bf16[128,512], index: 5, kind: input, shape index: {}]   ;;  %s4459_s6 = inlined_call_operand.hbm [shape: f32[1,512], index: 6, kind: input, shape index: {}]   ;;  %s4460_s7 = inlined_call_operand.vmem [shape: f32[1,128], index: 7, kind: input, shape index: {}]   ;;  %s4461_s8 = inlined_call_operand.hbm [shape: f32[1,128], index: 8, kind: input, shape index: {}]   ;;  %s4462_s9 = inlined_call_operand.hbm [shape: bf16[1152,128], index: 9, kind: input, shape index: {}]   ;;  %s4463_s10 = inlined_call_operand.hbm [shape: f32[1,128], index: 10, kind: input, shape index: {}]   ;;  %s4464_s11 = inlined_call_operand.vmem [shape: bf16[128,128], index: 11, kind: input, shape index: {}]   ;;  %s4465_s12 = inlined_call_operand.hbm [shape: f32[1,128], index: 12, kind: input, shape index: {}]   ;;  %s4466_s13 = inlined_call_operand.vmem [shape: f32[2,16,128], index: 13, kind: output, shape index: {}]  }
   0x1   :  { %19 = vsyncpa [#allocation6], 0 }
   0x2   :  { %20 = vsyncpa [#allocation9], 0 }
   0x3   :  { %21 = vsyncpa [#allocation12], 0 }
   0x4   :  { %22 = vsyncpa [#allocation15], 0  ;;  %s3991_s25 = smov [#allocation5]   ;;  %s3783_s29 = scalar_lea.hbm %s4455_s2, 256 }
   0x5   :  { %s40_s26 = sshll.u32 %s3991_s25, 4  ;;  %p3784_p0 = scmp.ne.s32.totalorder %s4455_s2, %s3783_s29  ;;  %s41_s26 = int_to_ptr.vmem [resolvable:$true] %s40_s26 }
   0x6   :  { %p3787_p1 = scmp.lt.u32.totalorder %s3783_s29, %s4455_s2 }
   0x8   :  { %p3789_p2 = pnand %p3787_p1, %p3784_p0 }
   0xa   :  { %3792 = shalt.err (!%p3789_p2)
}
   0xb   :  { %s3793_s17 = scalar_lea.vmem %s41_s26, 256  ;;  %p3798_p4 = scmp.lt.s32.totalorder %s41_s26, %s41_s26 }
   0xc   :  { %p3794_p3 = scmp.ne.s32.totalorder %s41_s26, %s3793_s17  ;;  %p3799_p5 = scmp.lt.s32.totalorder %s3793_s17, %s3793_s17 }
   0xe   :  { %p3800_p6 = por %p3799_p5, %p3798_p4 }
  0x10   :  { %p3801_p7 = pnand %p3800_p6, %p3794_p3 }
  0x12   :  { %3804 = shalt.err (!%p3801_p7)
}
  0x13   :  { %s3992_s18 = smov 128   ;;  %s3993_s19 = smov 8  }
  0x14   :  { %46 = dma.hbm_to_vmem [thread:$0]  %s4455_s2, 256, %s41_s26, [#allocation6], %s3992_s18, %s3992_s18, %s3993_s19  }
  0x15   :  { %s3994_s22 = smov [#allocation8]   ;;  %s3805_s27 = scalar_lea.hbm %s4458_s5, 4096 }
  0x16   :  { %s66_s23 = sshll.u32 %s3994_s22, 4  ;;  %p3806_p8 = scmp.ne.s32.totalorder %s4458_s5, %s3805_s27  ;;  %s67_s23 = int_to_ptr.vmem [resolvable:$true] %s66_s23 }
  0x17   :  { %p3809_p9 = scmp.lt.u32.totalorder %s3805_s27, %s4458_s5 }
  0x19   :  { %p3811_p10 = pnand %p3809_p9, %p3806_p8 }
  0x1b   :  { %3814 = shalt.err (!%p3811_p10)
}
  0x1c   :  { %s3815_s15 = scalar_lea.vmem %s67_s23, 4096  ;;  %p3820_p12 = scmp.lt.s32.totalorder %s67_s23, %s67_s23 }
  0x1d   :  { %p3816_p11 = scmp.ne.s32.totalorder %s67_s23, %s3815_s15  ;;  %p3821_p13 = scmp.lt.s32.totalorder %s3815_s15, %s3815_s15 }
  0x1f   :  { %p3822_p0 = por %p3821_p13, %p3820_p12 }
  0x21   :  { %p3823_p1 = pnand %p3822_p0, %p3816_p11 }
  0x23   :  { %3826 = shalt.err (!%p3823_p1)
}
  0x24   :  { %s3995_s2 = smov 256   ;;  %s3996_s26 = smov 16  }
  0x25   :  { %72 = dma.hbm_to_vmem [thread:$0]  %s4458_s5, 4096, %s67_s23, [#allocation9], %s3995_s2, %s3995_s2, %s3996_s26  }
  0x26   :  { %s3997_s18 = smov [#allocation11]   ;;  %s3998_s20 = smov [#allocation14]  }
  0x27   :  { %s91_s19 = sshll.u32 %s3997_s18, 4  ;;  %s113_s21 = sshll.u32 %s3998_s20, 4  ;;  %s92_s19 = int_to_ptr.vmem [resolvable:$true] %s91_s19  ;;  %s114_s21 = int_to_ptr.vmem [resolvable:$true] %s113_s21 }
  0x28   :  { %s3827_s25 = scalar_lea.hbm %s4461_s8, 16 }
  0x29   :  { %p3828_p2 = scmp.ne.s32.totalorder %s4461_s8, %s3827_s25  ;;  %p3831_p3 = scmp.lt.u32.totalorder %s3827_s25, %s4461_s8 }
  0x2b   :  { %p3833_p4 = pnand %p3831_p3, %p3828_p2 }
  0x2d   :  { %3836 = shalt.err (!%p3833_p4)
}
  0x2e   :  { %s3837_s5 = scalar_lea.vmem %s92_s19, 16  ;;  %s3841_s23 = scalar_lea.vmem %s92_s19, 32 }
  0x2f   :  { %p3838_p5 = scmp.ne.s32.totalorder %s92_s19, %s3837_s5  ;;  %p3842_p6 = scmp.lt.s32.totalorder %s92_s19, %s92_s19 }
  0x30   :  { %p3843_p7 = scmp.lt.s32.totalorder %s3841_s23, %s3837_s5 }
  0x32   :  { %p3844_p8 = por %p3843_p7, %p3842_p6 }
  0x34   :  { %p3845_p9 = pnand %p3844_p8, %p3838_p5 }
  0x36   :  { %3848 = shalt.err (!%p3845_p9)
}
  0x37   :  { %94 = dma.hbm_to_vmem [thread:$0]  %s4461_s8, 16, %s92_s19, [#allocation12]  }
  0x38   :  { %s3849_s16 = scalar_lea.hbm %s4463_s10, 16 }
  0x39   :  { %p3850_p10 = scmp.ne.s32.totalorder %s4463_s10, %s3849_s16  ;;  %p3853_p11 = scmp.lt.u32.totalorder %s3849_s16, %s4463_s10 }
  0x3b   :  { %p3855_p12 = pnand %p3853_p11, %p3850_p10 }
  0x3d   :  { %3858 = shalt.err (!%p3855_p12)
}
  0x3e   :  { %s3859_s24 = scalar_lea.vmem %s114_s21, 16  ;;  %s3863_s25 = scalar_lea.vmem %s114_s21, 32 }
  0x3f   :  { %p3860_p13 = scmp.ne.s32.totalorder %s114_s21, %s3859_s24  ;;  %p3864_p0 = scmp.lt.s32.totalorder %s114_s21, %s114_s21 }
  0x40   :  { %p3865_p1 = scmp.lt.s32.totalorder %s3863_s25, %s3859_s24 }
  0x42   :  { %p3866_p2 = por %p3865_p1, %p3864_p0 }
  0x44   :  { %p3867_p3 = pnand %p3866_p2, %p3860_p13 }
  0x46   :  { %3870 = shalt.err (!%p3867_p3)
}
  0x47   :  { %116 = dma.hbm_to_vmem [thread:$0]  %s4463_s10, 16, %s114_s21, [#allocation15]  }
  0x48   :  { %s3999_s27 = smov [#allocation3]   ;;  %s4000_s29 = smov [#allocation7]  }
  0x49   :  { %s29_s28 = sshll.u32 %s3999_s27, 4  ;;  %s52_s30 = sshll.u32 %s4000_s29, 4  ;;  %s30_s28 = int_to_ptr.vmem [resolvable:$true] %s29_s28  ;;  %s4128_s30 = int_to_ptr.vmem [resolvable:$true] %s52_s30 }
  0x4a   :  { %s3871_s14 = scalar_lea.hbm %s4453_s0, 32 }
  0x4b   :  { %p3872_p4 = scmp.ne.s32.totalorder %s4453_s0, %s3871_s14  ;;  %p3875_p5 = scmp.lt.u32.totalorder %s3871_s14, %s4453_s0 }
  0x4d   :  { %p3877_p6 = pnand %p3875_p5, %p3872_p4 }
  0x4f   :  { %3880 = shalt.err (!%p3877_p6)
}
  0x50   :  { %s3881_s10 = scalar_lea.vmem %s30_s28, 32  ;;  %p3886_p8 = scmp.lt.s32.totalorder %s30_s28, %s30_s28 }
  0x51   :  { %p3882_p7 = scmp.ne.s32.totalorder %s30_s28, %s3881_s10  ;;  %p3887_p9 = scmp.lt.s32.totalorder %s3881_s10, %s3881_s10 }
  0x53   :  { %p3888_p10 = por %p3887_p9, %p3886_p8 }
  0x55   :  { %p3889_p11 = pnand %p3888_p10, %p3882_p7 }
  0x57   :  { %3892 = shalt.err (!%p3889_p11)
}
  0x58   :  { %32 = dma.hbm_to_vmem [thread:$0]  %s4453_s0, 32, %s30_s28, [#allocation4]  }
  0x59   :  { %s3893_s22 = scalar_lea.hbm %s4456_s3, 8192 }
  0x5a   :  { %p3894_p12 = scmp.ne.s32.totalorder %s4456_s3, %s3893_s22  ;;  %p3897_p13 = scmp.lt.u32.totalorder %s3893_s22, %s4456_s3 }
  0x5c   :  { %p3899_p0 = pnand %p3897_p13, %p3894_p12 }
  0x5e   :  { %3902 = shalt.err (!%p3899_p0)
}
  0x5f   :  { %s3903_s27 = scalar_lea.vmem %s4128_s30, 8192  ;;  %p3908_p2 = scmp.lt.s32.totalorder %s4128_s30, %s4128_s30 }
  0x60   :  { %p3904_p1 = scmp.ne.s32.totalorder %s4128_s30, %s3903_s27  ;;  %p3909_p3 = scmp.lt.s32.totalorder %s3903_s27, %s3903_s27 }
  0x62   :  { %p3910_p4 = por %p3909_p3, %p3908_p2 }
  0x64   :  { %p3911_p5 = pnand %p3910_p4, %p3904_p1 }
  0x66   :  { %3914 = shalt.err (!%p3911_p5)
}
  0x67   :  { %s4001_s0 = smov 64   ;;  %s4002_s28 = smov 4  }
  0x68   :  { %58 = dma.hbm_to_vmem [thread:$0]  %s4456_s3, 8192, %s4128_s30, [#allocation6], %s4001_s0, %s4001_s0, %s4002_s28  }
  0x69   :  { %s4003_s23 = smov [#allocation10]   ;;  %s4004_s15 = smov [#allocation13]  }
  0x6a   :  { %s79_s14 = sshll.u32 %s4003_s23, 4  ;;  %s100_s2 = sshll.u32 %s4004_s15, 4  ;;  %s80_s14 = int_to_ptr.vmem [resolvable:$true] %s79_s14  ;;  %s4162_s2 = int_to_ptr.vmem [resolvable:$true] %s100_s2 }
  0x6b   :  { %s3915_s10 = scalar_lea.hbm %s4459_s6, 64 }
  0x6c   :  { %p3916_p6 = scmp.ne.s32.totalorder %s4459_s6, %s3915_s10  ;;  %p3919_p7 = scmp.lt.u32.totalorder %s3915_s10, %s4459_s6 }
  0x6e   :  { %p3921_p8 = pnand %p3919_p7, %p3916_p6 }
  0x70   :  { %3924 = shalt.err (!%p3921_p8)
}
  0x71   :  { %s3925_s3 = scalar_lea.vmem %s80_s14, 64  ;;  %p3930_p10 = scmp.lt.s32.totalorder %s80_s14, %s80_s14 }
  0x72   :  { %p3926_p9 = scmp.ne.s32.totalorder %s80_s14, %s3925_s3  ;;  %p3931_p11 = scmp.lt.s32.totalorder %s3925_s3, %s3925_s3 }
  0x74   :  { %p3932_p12 = por %p3931_p11, %p3930_p10 }
  0x76   :  { %p3933_p13 = pnand %p3932_p12, %p3926_p9 }
  0x78   :  { %3936 = shalt.err (!%p3933_p13)
}
  0x79   :  { %82 = dma.hbm_to_vmem [thread:$0]  %s4459_s6, 64, %s80_s14, [#allocation9]  }
  0x7a   :  { %s3937_s8 = scalar_lea.hbm %s4462_s9, 9216 }
  0x7b   :  { %p3938_p0 = scmp.ne.s32.totalorder %s4462_s9, %s3937_s8  ;;  %p3941_p1 = scmp.lt.u32.totalorder %s3937_s8, %s4462_s9 }
  0x7d   :  { %p3943_p2 = pnand %p3941_p1, %p3938_p0 }
  0x7f   :  { %3946 = shalt.err (!%p3943_p2)
}
  0x80   :  { %s3947_s23 = scalar_lea.vmem %s4162_s2, 9216  ;;  %p3952_p4 = scmp.lt.s32.totalorder %s4162_s2, %s4162_s2 }
  0x81   :  { %p3948_p3 = scmp.ne.s32.totalorder %s4162_s2, %s3947_s23  ;;  %p3953_p5 = scmp.lt.s32.totalorder %s3947_s23, %s3947_s23 }
  0x83   :  { %p3954_p6 = por %p3953_p5, %p3952_p4 }
  0x85   :  { %p3955_p7 = pnand %p3954_p6, %p3948_p3 }
  0x87   :  { %3958 = shalt.err (!%p3955_p7)
}
  0x88   :  { %106 = dma.hbm_to_vmem [thread:$0]  %s4462_s9, 9216, %s4162_s2, [#allocation12], %s4001_s0, %s4001_s0, %s4002_s28  }
  0x89   :  { %s4005_s15 = smov [#allocation16]   ;;  %s3959_s21 = scalar_lea.hbm %s4465_s12, 16 }
  0x8a   :  { %s125_s26 = sshll.u32 %s4005_s15, 4  ;;  %p3960_p8 = scmp.ne.s32.totalorder %s4465_s12, %s3959_s21  ;;  %s126_s26 = int_to_ptr.vmem [resolvable:$true] %s125_s26 }
  0x8b   :  { %p3963_p9 = scmp.lt.u32.totalorder %s3959_s21, %s4465_s12 }
  0x8d   :  { %p3965_p10 = pnand %p3963_p9, %p3960_p8 }
  0x8f   :  { %3968 = shalt.err (!%p3965_p10)
}
  0x90   :  { %s3969_s30 = scalar_lea.vmem %s126_s26, 16  ;;  %s3973_s9 = scalar_lea.vmem %s126_s26, 32 }
  0x91   :  { %p3970_p11 = scmp.ne.s32.totalorder %s126_s26, %s3969_s30  ;;  %p3974_p12 = scmp.lt.s32.totalorder %s126_s26, %s126_s26 }
  0x92   :  { %p3975_p13 = scmp.lt.s32.totalorder %s3973_s9, %s3969_s30 }
  0x94   :  { %p3976_p0 = por %p3975_p13, %p3974_p12 }
  0x96   :  { %p3977_p1 = pnand %p3976_p0, %p3970_p11 }
  0x98   :  { %3980 = shalt.err (!%p3977_p1)
}
  0x99   :  { %128 = dma.hbm_to_vmem [thread:$0]  %s4465_s12, 16, %s126_s26, [#allocation15]  }
  0x9a   :  { %3981 = dma.done.wait [#allocation4], 32  }
  0x9b   :  { %3982 = vsyncadd [#allocation4], 4294967264 }
  0x9c   :  { %3983 = dma.done.wait [#allocation6], 8448  }
  0x9d   :  { %3984 = vsyncadd [#allocation6], 4294958848 }
  0x9e   :  { %3985 = dma.done.wait [#allocation9], 4160  }
  0x9f   :  { %3986 = vsyncadd [#allocation9], 4294963136 }
  0xa0   :  { %3987 = dma.done.wait [#allocation12], 9232  }
  0xa1   :  { %3988 = vsyncadd [#allocation12], 4294958064 }
  0xa2   :  { %3989 = dma.done.wait [#allocation15], 32  }
  0xa3   :  { %3990 = vsyncadd [#allocation15], 4294967264  ;;  %v4006_v0 = vmov 0.0   ;;  %vm159_vm0 = vcmask 1041408   ;;  %v157_v1 = vld [vmem:[#allocation3] sm:$0x3] }
  0xa4   :  { %3324 = vmatprep.subr.bf16.mxu0 %v4006_v0  ;;  %1598 = vst [vmem:[#allocation2] sm:$0x3f] %v4006_v0  ;;  %1599 = vst [vmem:[#allocation2 + $0x8] sm:$0x3f] %v4006_v0  ;;  %3344 = vmatprep.subr.bf16.mxu1 %v4006_v0  ;;  %v158_v2 = vmul.f32 %v157_v1, %v157_v1  ;;  %v3545_v3 = vld [vmem:[#allocation7] sm:$0xff]   ;;  %v3546_v5 = vld [vmem:[#allocation7 + $0x8] sm:$0xff]  }
  0xa5   :  { %1600 = vst [vmem:[#allocation2 + $0x10] sm:$0x3f] %v4006_v0  ;;  %1601 = vst [vmem:[#allocation2 + $0x18] sm:$0x3f] %v4006_v0  ;;  %3325 = vmatpush3.bf16.msra.mxu0 %v3545_v3  ;;  %v3547_v6 = vld [vmem:[#allocation7 + $0x10] sm:$0xff]   ;;  %v3548_v7 = vld [vmem:[#allocation7 + $0x18] sm:$0xff]  }
  0xa6   :  { %1602 = vst [vmem:[#allocation2 + $0x20] sm:$0x3f] %v4006_v0  ;;  %1603 = vst [vmem:[#allocation2 + $0x28] sm:$0x3f] %v4006_v0  ;;  %v160_v4 = vsel %vm159_vm0, %v158_v2, 0.0  ;;  %3326 = vmatprep.subr.bf16.mxu0 %v4006_v0  ;;  %v3549_v8 = vld [vmem:[#allocation7 + $0x20] sm:$0xff]  }
  0xa7   :  { %1604 = vst [vmem:[#allocation2 + $0x30] sm:$0x3f] %v4006_v0  ;;  %1605 = vst [vmem:[#allocation2 + $0x38] sm:$0x3f] %v4006_v0  ;;  %161 = vadd.xlane.f32.xlu0 %v160_v4  ;;  %v3550_v9 = vld [vmem:[#allocation7 + $0x28] sm:$0xff]   ;;  %vm4007_vm1 = vmmov 0  }
  0xa8   :  { %1606 = vst [vmem:[#allocation2 + $0x40] sm:$0x3f] %v4006_v0  ;;  %1607 = vst [vmem:[#allocation2 + $0x48] sm:$0x3f] %v4006_v0  ;;  %3340 = vmatprep.mubr.msk.bf16.mxu0 %vm4007_vm1, %v4006_v0  ;;  %v3551_v10 = vld [vmem:[#allocation7 + $0x30] sm:$0xff]   ;;  %3360 = vmatprep.mubr.msk.bf16.mxu1 %vm4007_vm1, %v4006_v0  ;;  %v3552_v11 = vld [vmem:[#allocation7 + $0x38] sm:$0xff]  }
  0xa9   :  { %1608 = vst [vmem:[#allocation2 + $0x50] sm:$0x3f] %v4006_v0  ;;  %1609 = vst [vmem:[#allocation2 + $0x58] sm:$0x3f] %v4006_v0  ;;  %3327 = vmatpush3.bf16.msra.mxu0 %v3546_v5  ;;  %v3553_v12 = vld [vmem:[#allocation7 + $0x40] sm:$0xff]   ;;  %v3554_v13 = vld [vmem:[#allocation7 + $0x48] sm:$0xff]  }
  0xaa   :  { %3328 = vmatprep.subr.bf16.mxu0 %v4006_v0  ;;  %3345 = vmatpush3.bf16.msra.mxu1 %v3553_v12  ;;  %v3555_v14 = vld [vmem:[#allocation7 + $0x50] sm:$0xff]   ;;  %v3556_v15 = vld [vmem:[#allocation7 + $0x58] sm:$0xff]   ;;  %v3557_v16 = vld [vmem:[#allocation7 + $0x60] sm:$0xff]  }
  0xab   :  { %3346 = vmatprep.subr.bf16.mxu1 %v4006_v0  ;;  %v3558_v17 = vld [vmem:[#allocation7 + $0x68] sm:$0xff]   ;;  %v3559_v24 = vld [vmem:[#allocation7 + $0x70] sm:$0xff]   ;;  %v3560_v25 = vld [vmem:[#allocation7 + $0x78] sm:$0xff]  }
  0xac   :  { %v3561_v26 = vld [vmem:[#allocation7 + $0x80] sm:$0xff]   ;;  %v3562_v27 = vld [vmem:[#allocation7 + $0x88] sm:$0xff]   ;;  %v3563_v28 = vld [vmem:[#allocation7 + $0x90] sm:$0xff]  }
  0xad   :  { %3329 = vmatpush3.bf16.msra.mxu0 %v3547_v6  ;;  %v3564_v29 = vld [vmem:[#allocation7 + $0x98] sm:$0xff]   ;;  %v3565_v30 = vld [vmem:[#allocation7 + $0xa0] sm:$0xff]   ;;  %v3566_v31 = vld [vmem:[#allocation7 + $0xa8] sm:$0xff]  }
  0xae   :  { %3330 = vmatprep.subr.bf16.mxu0 %v4006_v0  ;;  %3347 = vmatpush3.bf16.msra.mxu1 %v3554_v13  ;;  %v2932_v32 = vld [vmem:[%s4457_s4] ss:$0 sm:$0xff]  ;;  %v3567_v41 = vld [vmem:[#allocation7 + $0xb0] sm:$0xff]   ;;  %v3568_v42 = vld [vmem:[#allocation7 + $0xb8] sm:$0xff]  }
  0xaf   :  { %3348 = vmatprep.subr.bf16.mxu1 %v4006_v0  ;;  %v3569_v43 = vld [vmem:[#allocation7 + $0xc0] sm:$0xff]   ;;  %v3570_v44 = vld [vmem:[#allocation7 + $0xc8] sm:$0xff]   ;;  %v3571_v45 = vld [vmem:[#allocation7 + $0xd0] sm:$0xff]  }
  0xb0   :  { %v3572_v46 = vld [vmem:[#allocation7 + $0xd8] sm:$0xff]   ;;  %v3573_v47 = vld [vmem:[#allocation7 + $0xe0] sm:$0xff]   ;;  %v3574_v48 = vld [vmem:[#allocation7 + $0xe8] sm:$0xff]  }
  0xb1   :  { %3331 = vmatpush3.bf16.msra.mxu0 %v3548_v7  ;;  %v2941_v49 = vld [vmem:[%s4457_s4 + $0x1] ss:$0 sm:$0xff]  ;;  %v3575_v58 = vld [vmem:[#allocation7 + $0xf0] sm:$0xff]   ;;  %v3576_v59 = vld [vmem:[#allocation7 + $0xf8] sm:$0xff]  }
  0xb2   :  { %3332 = vmatprep.subr.bf16.mxu0 %v4006_v0  ;;  %3349 = vmatpush3.bf16.msra.mxu1 %v3555_v14  ;;  %v3577_v60 = vld [vmem:[#allocation7 + $0x100] sm:$0xff]   ;;  %v3578_v61 = vld [vmem:[#allocation7 + $0x108] sm:$0xff]   ;;  %v3579_v62 = vld [vmem:[#allocation7 + $0x110] sm:$0xff]  }
  0xb3   :  { %3350 = vmatprep.subr.bf16.mxu1 %v4006_v0  ;;  %v3580_v63 = vld [vmem:[#allocation7 + $0x118] sm:$0xff]   ;;  %v3582_v2 = vld [vmem:[#allocation7 + $0x128] sm:$0xff]   ;;  %v2950_v3 = vld [vmem:[%s4457_s4 + $0x2] ss:$0 sm:$0xff] }
  0xb4   :  { %v3583_v12 = vld [vmem:[#allocation7 + $0x130] sm:$0xff]   ;;  %v3584_v13 = vld [vmem:[#allocation7 + $0x138] sm:$0xff]   ;;  %v3585_v14 = vld [vmem:[#allocation7 + $0x140] sm:$0xff]  }
  0xb5   :  { %3333 = vmatpush3.bf16.msra.mxu0 %v3549_v8 }
  0xb6   :  { %3334 = vmatprep.subr.bf16.mxu0 %v4006_v0  ;;  %3351 = vmatpush3.bf16.msra.mxu1 %v3556_v15  ;;  %v3586_v15 = vld [vmem:[#allocation7 + $0x148] sm:$0xff]  }
  0xb7   :  { %3352 = vmatprep.subr.bf16.mxu1 %v4006_v0 }
  0xb9   :  { %3335 = vmatpush3.bf16.msra.mxu0 %v3550_v9 }
  0xba   :  { %3336 = vmatprep.subr.bf16.mxu0 %v4006_v0  ;;  %3353 = vmatpush3.bf16.msra.mxu1 %v3557_v16  ;;  %v3587_v16 = vld [vmem:[#allocation7 + $0x150] sm:$0xff]  }
  0xbb   :  { %3354 = vmatprep.subr.bf16.mxu1 %v4006_v0 }
  0xbd   :  { %3337 = vmatpush3.bf16.msra.mxu0 %v3551_v10 }
  0xbe   :  { %3338 = vmatprep.subr.bf16.mxu0 %v4006_v0  ;;  %3355 = vmatpush3.bf16.msra.mxu1 %v3558_v17  ;;  %v3588_v17 = vld [vmem:[#allocation7 + $0x158] sm:$0xff]  }
  0xbf   :  { %3356 = vmatprep.subr.bf16.mxu1 %v4006_v0 }
  0xc1   :  { %3339 = vmatpush3.bf16.msra.mxu0 %v3552_v11 }
  0xc2   :  { %3364 = vmatprep.subr.bf16.mxu0 %v4006_v0  ;;  %3357 = vmatpush3.bf16.msra.mxu1 %v3559_v24 }
  0xc3   :  { %3358 = vmatprep.subr.bf16.mxu1 %v4006_v0 }
  0xc6   :  { %3359 = vmatpush3.bf16.msra.mxu1 %v3560_v25 }
  0xc7   :  { %3384 = vmatprep.subr.bf16.mxu1 %v4006_v0 }
 0x134   :  { %v162_v18 = vpop.xlane.xlu0 %161 }
 0x135   :  { %v164_v19 = vmul.f32 0.0078125, %v162_v18  ;;  %v3589_v18 = vld [vmem:[#allocation7 + $0x160] sm:$0xff]  }
 0x137   :  { %v165_v20 = vadd.f32 1e-08, %v164_v19  ;;  %v3590_v19 = vld [vmem:[#allocation7 + $0x168] sm:$0xff]  }
 0x139   :  { %3773 = vrsqrt.f32 %v165_v20  ;;  %v2959_v20 = vld [vmem:[%s4457_s4 + $0x3] ss:$0 sm:$0xff] }
 0x143   :  { %v3774_v21 = vpop.eup %3773 }
 0x144   :  { %v167_v22 = vmul.f32 %v3774_v21, %v157_v1  ;;  %v3581_v1 = vld [vmem:[#allocation7 + $0x120] sm:$0xff]  }
 0x146   :  { %v168_v23 = vpack.c.bf16 %v167_v22, %v167_v22 }
 0x148   :  { %3341 = vmatmul.mubr.bf16.vlgmr.msra.gmra.mrb[0].mxu0 %v168_v23 }
 0x149   :  { %3380 = vmatprep.mubr.msk.bf16.mxu0 %vm4007_vm1, %v4006_v0  ;;  %3365 = vmatpush3.bf16.msra.mxu0 %v3561_v26 }
 0x14a   :  { %3366 = vmatprep.subr.bf16.mxu0 %v4006_v0 }
 0x14d   :  { %3367 = vmatpush3.bf16.msra.mxu0 %v3562_v27 }
 0x14e   :  { %3368 = vmatprep.subr.bf16.mxu0 %v4006_v0 }
 0x151   :  { %3369 = vmatpush3.bf16.msra.mxu0 %v3563_v28 }
 0x152   :  { %3370 = vmatprep.subr.bf16.mxu0 %v4006_v0 }
 0x155   :  { %3371 = vmatpush3.bf16.msra.mxu0 %v3564_v29  ;;  %v3591_v29 = vld [vmem:[#allocation7 + $0x170] sm:$0xff]  }
 0x156   :  { %3372 = vmatprep.subr.bf16.mxu0 %v4006_v0 }
 0x159   :  { %3373 = vmatpush3.bf16.msra.mxu0 %v3565_v30  ;;  %v3592_v30 = vld [vmem:[#allocation7 + $0x178] sm:$0xff]  }
 0x15a   :  { %3374 = vmatprep.subr.bf16.mxu0 %v4006_v0 }
 0x15d   :  { %3375 = vmatpush3.bf16.msra.mxu0 %v3566_v31  ;;  %v3593_v31 = vld [vmem:[#allocation7 + $0x180] sm:$0xff]  }
 0x15e   :  { %3376 = vmatprep.subr.bf16.mxu0 %v4006_v0 }
 0x161   :  { %3377 = vmatpush3.bf16.msra.mxu0 %v3567_v41 }
 0x162   :  { %3378 = vmatprep.subr.bf16.mxu0 %v4006_v0 }
 0x165   :  { %3379 = vmatpush3.bf16.msra.mxu0 %v3568_v42 }
 0x166   :  { %3404 = vmatprep.subr.bf16.mxu0 %v4006_v0 }
 0x21b   :  { %v272_v33 = vpop.f32.mrb[0].mxu0 }
 0x21c   :  { %v273_v34 = vadd.f32 %v2932_v32, %v272_v33  ;;  %v3342_v35 = vpop.f32.mrb[1].mxu0  ;;  %v3594_v32 = vld [vmem:[#allocation7 + $0x188] sm:$0xff]   ;;  %v3595_v33 = vld [vmem:[#allocation7 + $0x190] sm:$0xff]  }
 0x21d   :  { %v275_v36 = vpop.f32.mrb[2].mxu0  ;;  %v3597_v35 = vld [vmem:[#allocation7 + $0x1a0] sm:$0xff]  }
 0x21e   :  { %vm278_vm2 = vcmp.ge.f32.partialorder %v273_v34, 0.0  ;;  %v279_v37 = vmul.f32 0.2, %v273_v34  ;;  %v3343_v38 = vpop.f32.mrb[3].mxu0  ;;  %v3598_v36 = vld [vmem:[#allocation7 + $0x1a8] sm:$0xff]  }
 0x220   :  { %v280_v39 = vsel %vm278_vm2, %v273_v34, %v279_v37  ;;  %v3596_v34 = vld [vmem:[#allocation7 + $0x198] sm:$0xff]   ;;  %v2968_v37 = vld [vmem:[%s4457_s4 + $0x4] ss:$0 sm:$0xff] }
 0x221   :  { %v281_v40 = vpack.c.bf16 %v280_v39, %v280_v39 }
 0x223   :  { %3361 = vmatmul.mubr.bf16.vlgmr.msra.gmra.mrb[0].mxu1 %v281_v40 }
 0x224   :  { %3400 = vmatprep.mubr.msk.bf16.mxu1 %vm4007_vm1, %v4006_v0  ;;  %3385 = vmatpush3.bf16.msra.mxu1 %v3569_v43 }
 0x225   :  { %3386 = vmatprep.subr.bf16.mxu1 %v4006_v0 }
 0x228   :  { %3387 = vmatpush3.bf16.msra.mxu1 %v3570_v44 }
 0x229   :  { %3388 = vmatprep.subr.bf16.mxu1 %v4006_v0 }
 0x22c   :  { %3389 = vmatpush3.bf16.msra.mxu1 %v3571_v45 }
 0x22d   :  { %3390 = vmatprep.subr.bf16.mxu1 %v4006_v0 }
 0x230   :  { %3391 = vmatpush3.bf16.msra.mxu1 %v3572_v46  ;;  %v3599_v46 = vld [vmem:[#allocation7 + $0x1b0] sm:$0xff]  }
 0x231   :  { %3392 = vmatprep.subr.bf16.mxu1 %v4006_v0 }
 0x234   :  { %3393 = vmatpush3.bf16.msra.mxu1 %v3573_v47  ;;  %v3600_v47 = vld [vmem:[#allocation7 + $0x1b8] sm:$0xff]  }
 0x235   :  { %3394 = vmatprep.subr.bf16.mxu1 %v4006_v0 }
 0x238   :  { %3395 = vmatpush3.bf16.msra.mxu1 %v3574_v48  ;;  %v3601_v48 = vld [vmem:[#allocation7 + $0x1c0] sm:$0xff]  }
 0x239   :  { %3396 = vmatprep.subr.bf16.mxu1 %v4006_v0 }
 0x23c   :  { %3397 = vmatpush3.bf16.msra.mxu1 %v3575_v58 }
 0x23d   :  { %3398 = vmatprep.subr.bf16.mxu1 %v4006_v0 }
 0x240   :  { %3399 = vmatpush3.bf16.msra.mxu1 %v3576_v59 }
 0x241   :  { %3424 = vmatprep.subr.bf16.mxu1 %v4006_v0 }
 0x2f6   :  { %v386_v50 = vpop.f32.mrb[0].mxu1 }
 0x2f7   :  { %v387_v51 = vadd.f32 %v2941_v49, %v386_v50  ;;  %v3362_v52 = vpop.f32.mrb[1].mxu1  ;;  %v3602_v49 = vld [vmem:[#allocation7 + $0x1c8] sm:$0xff]   ;;  %v3603_v50 = vld [vmem:[#allocation7 + $0x1d0] sm:$0xff]  }
 0x2f8   :  { %v389_v53 = vpop.f32.mrb[2].mxu1  ;;  %v3605_v52 = vld [vmem:[#allocation7 + $0x1e0] sm:$0xff]  }
 0x2f9   :  { %vm392_vm3 = vcmp.ge.f32.partialorder %v387_v51, 0.0  ;;  %v393_v54 = vmul.f32 0.2, %v387_v51  ;;  %v3363_v55 = vpop.f32.mrb[3].mxu1  ;;  %v3606_v53 = vld [vmem:[#allocation7 + $0x1e8] sm:$0xff]  }
 0x2fb   :  { %v394_v56 = vsel %vm392_vm3, %v387_v51, %v393_v54  ;;  %v3604_v51 = vld [vmem:[#allocation7 + $0x1d8] sm:$0xff]   ;;  %v2977_v54 = vld [vmem:[%s4457_s4 + $0x5] ss:$0 sm:$0xff] }
 0x2fc   :  { %v395_v57 = vpack.c.bf16 %v394_v56, %v394_v56 }
 0x2fe   :  { %3381 = vmatmul.mubr.bf16.vlgmr.msra.gmra.mrb[4].mxu0 %v395_v57 }
 0x2ff   :  { %3420 = vmatprep.mubr.msk.bf16.mxu0 %vm4007_vm1, %v4006_v0  ;;  %3405 = vmatpush3.bf16.msra.mxu0 %v3577_v60 }
 0x300   :  { %3406 = vmatprep.subr.bf16.mxu0 %v4006_v0 }
 0x303   :  { %3407 = vmatpush3.bf16.msra.mxu0 %v3578_v61 }
 0x304   :  { %3408 = vmatprep.subr.bf16.mxu0 %v4006_v0 }
 0x307   :  { %3409 = vmatpush3.bf16.msra.mxu0 %v3579_v62 }
 0x308   :  { %3410 = vmatprep.subr.bf16.mxu0 %v4006_v0 }
 0x30b   :  { %3411 = vmatpush3.bf16.msra.mxu0 %v3580_v63  ;;  %v3607_v63 = vld [vmem:[#allocation7 + $0x1f0] sm:$0xff]  }
 0x30c   :  { %3412 = vmatprep.subr.bf16.mxu0 %v4006_v0 }
 0x30f   :  { %3413 = vmatpush3.bf16.msra.mxu0 %v3581_v1  ;;  %v3608_v1 = vld [vmem:[#allocation7 + $0x1f8] sm:$0xff]  }
 0x310   :  { %3414 = vmatprep.subr.bf16.mxu0 %v4006_v0 }
 0x313   :  { %3415 = vmatpush3.bf16.msra.mxu0 %v3582_v2  ;;  %v3609_v2 = vld [vmem:[#allocation8] ss:$16 sps:$4 sm:$0xff]  }
 0x314   :  { %3416 = vmatprep.subr.bf16.mxu0 %v4006_v0 }
 0x317   :  { %3417 = vmatpush3.bf16.msra.mxu0 %v3583_v12  ;;  %v3627_v12 = vld [vmem:[#allocation8 + $0x60] ss:$16 sps:$4 sm:$0xff]  }
 0x318   :  { %3418 = vmatprep.subr.bf16.mxu0 %v4006_v0 }
 0x31b   :  { %3419 = vmatpush3.bf16.msra.mxu0 %v3584_v13  ;;  %v3635_v13 = vld [vmem:[#allocation8 + $0x84] ss:$16 sps:$4 sm:$0xff]  }
 0x31c   :  { %3444 = vmatprep.subr.bf16.mxu0 %v4006_v0 }
 0x3d1   :  { %v500_v4 = vpop.f32.mrb[4].mxu0 }
 0x3d2   :  { %v501_v5 = vadd.f32 %v2950_v3, %v500_v4  ;;  %v3382_v6 = vpop.f32.mrb[5].mxu0  ;;  %v3611_v3 = vld [vmem:[#allocation8 + $0x4] ss:$16 sps:$4 sm:$0xff]   ;;  %v3614_v4 = vld [vmem:[#allocation8 + $0xc] ss:$16 sps:$4 sm:$0xff]  }
 0x3d3   :  { %v503_v7 = vpop.f32.mrb[6].mxu0  ;;  %v3615_v6 = vld [vmem:[#allocation8 + $0x20] ss:$16 sps:$4 sm:$0xff]  }
 0x3d4   :  { %vm506_vm4 = vcmp.ge.f32.partialorder %v501_v5, 0.0  ;;  %v507_v8 = vmul.f32 0.2, %v501_v5  ;;  %v3383_v9 = vpop.f32.mrb[7].mxu0  ;;  %v3623_v7 = vld [vmem:[#allocation8 + $0x44] ss:$16 sps:$4 sm:$0xff]  }
 0x3d5   :  { %v1469_v9 = vld [vmem:[%s4454_s1 + $0x8] sm:$0xff] }
 0x3d6   :  { %v508_v10 = vsel %vm506_vm4, %v501_v5, %v507_v8  ;;  %v3617_v5 = vld [vmem:[#allocation8 + $0x24] ss:$16 sps:$4 sm:$0xff]   ;;  %v4008_v8 = vmov 0  }
 0x3d7   :  { %v509_v11 = vpack.c.bf16 %v508_v10, %v508_v10  ;;  %3544 = vset.pattern.permute.xlu1 %v4008_v8  ;;  %3543 = vset.pattern.permute.xlu0 %v4008_v8  ;;  %v3629_v10 = vld [vmem:[#allocation8 + $0x64] ss:$16 sps:$4 sm:$0xff]  }
 0x3d8   :  { %1488 = vperm.xlu1 %3544, %v1469_v9   ;;  %v3673_v9 = vld [vmem:[#allocation13 + $0x60] sm:$0xff]  }
 0x3d9   :  { %3401 = vmatmul.mubr.bf16.vlgmr.msra.gmra.mrb[4].mxu1 %v509_v11  ;;  %v1470_v11 = vld [vmem:[%s4454_s1 + $0x10] sm:$0xff] }
 0x3da   :  { %3440 = vmatprep.mubr.msk.bf16.mxu1 %vm4007_vm1, %v4006_v0  ;;  %3425 = vmatpush3.bf16.msra.mxu1 %v3585_v14  ;;  %v1471_v14 = vld [vmem:[%s4454_s1 + $0x18] sm:$0xff] }
 0x3db   :  { %3426 = vmatprep.subr.bf16.mxu1 %v4006_v0 }
 0x3dc   :  { %1493 = vperm.xlu1 %3544, %v1470_v11   ;;  %v3676_v11 = vld [vmem:[#allocation13 + $0xa0] sm:$0xff]  }
 0x3de   :  { %3427 = vmatpush3.bf16.msra.mxu1 %v3586_v15  ;;  %v1468_v15 = vld [vmem:[%s4454_s1] sm:$0xff] }
 0x3df   :  { %3428 = vmatprep.subr.bf16.mxu1 %v4006_v0  ;;  %1483 = vperm.xlu0 %3543, %v1468_v15   ;;  %v3680_v15 = vld [vmem:[#allocation13 + $0xa8] sm:$0xff]  }
 0x3e0   :  { %1498 = vperm.xlu1 %3544, %v1471_v14   ;;  %v3679_v14 = vld [vmem:[#allocation13 + $0x28] sm:$0xff]  }
 0x3e2   :  { %3429 = vmatpush3.bf16.msra.mxu1 %v3587_v16  ;;  %v3633_v16 = vld [vmem:[#allocation8 + $0x80] ss:$16 sps:$4 sm:$0xff]  }
 0x3e3   :  { %3430 = vmatprep.subr.bf16.mxu1 %v4006_v0 }
 0x3e6   :  { %3431 = vmatpush3.bf16.msra.mxu1 %v3588_v17  ;;  %v3641_v17 = vld [vmem:[#allocation8 + $0xa4] ss:$16 sps:$4 sm:$0xff]  }
 0x3e7   :  { %3432 = vmatprep.subr.bf16.mxu1 %v4006_v0 }
 0x3ea   :  { %3433 = vmatpush3.bf16.msra.mxu1 %v3589_v18  ;;  %v3639_v18 = vld [vmem:[#allocation8 + $0xa0] ss:$16 sps:$4 sm:$0xff]  }
 0x3eb   :  { %3434 = vmatprep.subr.bf16.mxu1 %v4006_v0 }
 0x3ee   :  { %3435 = vmatpush3.bf16.msra.mxu1 %v3590_v19  ;;  %v2986_v19 = vld [vmem:[%s4457_s4 + $0x6] ss:$0 sm:$0xff] }
 0x3ef   :  { %3436 = vmatprep.subr.bf16.mxu1 %v4006_v0 }
 0x3f2   :  { %3437 = vmatpush3.bf16.msra.mxu1 %v3591_v29  ;;  %v3620_v29 = vld [vmem:[#allocation8 + $0x2c] ss:$16 sps:$4 sm:$0xff]  }
 0x3f3   :  { %3438 = vmatprep.subr.bf16.mxu1 %v4006_v0 }
 0x3f6   :  { %3439 = vmatpush3.bf16.msra.mxu1 %v3592_v30  ;;  %v3618_v30 = vld [vmem:[#allocation8 + $0x28] ss:$16 sps:$4 sm:$0xff]  }
 0x3f7   :  { %3464 = vmatprep.subr.bf16.mxu1 %v4006_v0 }
 0x4ac   :  { %v614_v21 = vpop.f32.mrb[4].mxu1 }
 0x4ad   :  { %v615_v22 = vadd.f32 %v2959_v20, %v614_v21  ;;  %v3402_v23 = vpop.f32.mrb[5].mxu1 }
 0x4ae   :  { %v617_v24 = vpop.f32.mrb[6].mxu1 }
 0x4af   :  { %vm620_vm5 = vcmp.ge.f32.partialorder %v615_v22, 0.0  ;;  %v621_v25 = vmul.f32 0.2, %v615_v22  ;;  %v3403_v26 = vpop.f32.mrb[7].mxu1 }
 0x4b1   :  { %v622_v27 = vsel %vm620_vm5, %v615_v22, %v621_v25 }
 0x4b2   :  { %v623_v28 = vpack.c.bf16 %v622_v27, %v622_v27  ;;  %v3612_v27 = vld [vmem:[#allocation8 + $0x8] ss:$16 sps:$4 sm:$0xff]  }
 0x4b4   :  { %3421 = vmatmul.mubr.bf16.vlgmr.msra.gmra.mrb[8].mxu0 %v623_v28 }
 0x4b5   :  { %3460 = vmatprep.mubr.msk.bf16.mxu0 %vm4007_vm1, %v4006_v0  ;;  %3445 = vmatpush3.bf16.msra.mxu0 %v3593_v31  ;;  %v3626_v31 = vld [vmem:[#allocation8 + $0x4c] ss:$16 sps:$4 sm:$0xff]  }
 0x4b6   :  { %3446 = vmatprep.subr.bf16.mxu0 %v4006_v0 }
 0x4b9   :  { %3447 = vmatpush3.bf16.msra.mxu0 %v3594_v32  ;;  %v3624_v32 = vld [vmem:[#allocation8 + $0x48] ss:$16 sps:$4 sm:$0xff]  }
 0x4ba   :  { %3448 = vmatprep.subr.bf16.mxu0 %v4006_v0 }
 0x4bd   :  { %3449 = vmatpush3.bf16.msra.mxu0 %v3595_v33  ;;  %v3632_v33 = vld [vmem:[#allocation8 + $0x6c] ss:$16 sps:$4 sm:$0xff]  }
 0x4be   :  { %3450 = vmatprep.subr.bf16.mxu0 %v4006_v0 }
 0x4c1   :  { %3451 = vmatpush3.bf16.msra.mxu0 %v3596_v34  ;;  %v3630_v34 = vld [vmem:[#allocation8 + $0x68] ss:$16 sps:$4 sm:$0xff]  }
 0x4c2   :  { %3452 = vmatprep.subr.bf16.mxu0 %v4006_v0 }
 0x4c5   :  { %3453 = vmatpush3.bf16.msra.mxu0 %v3597_v35  ;;  %v3638_v35 = vld [vmem:[#allocation8 + $0x8c] ss:$16 sps:$4 sm:$0xff]  }
 0x4c6   :  { %3454 = vmatprep.subr.bf16.mxu0 %v4006_v0 }
 0x4c9   :  { %3455 = vmatpush3.bf16.msra.mxu0 %v3598_v36  ;;  %v3636_v36 = vld [vmem:[#allocation8 + $0x88] ss:$16 sps:$4 sm:$0xff]  }
 0x4ca   :  { %3456 = vmatprep.subr.bf16.mxu0 %v4006_v0 }
 0x4cd   :  { %3457 = vmatpush3.bf16.msra.mxu0 %v3599_v46  ;;  %v3654_v46 = vld [vmem:[#allocation8 + $0xe8] ss:$16 sps:$4 sm:$0xff]  }
 0x4ce   :  { %3458 = vmatprep.subr.bf16.mxu0 %v4006_v0 }
 0x4d1   :  { %3459 = vmatpush3.bf16.msra.mxu0 %v3600_v47  ;;  %v3657_v47 = vld [vmem:[#allocation13 + $0x40] sm:$0xff]  }
 0x4d2   :  { %1294 = vmatprep.subr.bf16.mxu0 %v3611_v3  ;;  %v3667_v3 = vld [vmem:[#allocation13 + $0x10] sm:$0xff]  }
 0x587   :  { %v728_v38 = vpop.f32.mrb[8].mxu0 }
 0x588   :  { %v729_v39 = vadd.f32 %v2968_v37, %v728_v38  ;;  %v3422_v40 = vpop.f32.mrb[9].mxu0  ;;  %v3644_v37 = vld [vmem:[#allocation8 + $0xac] ss:$16 sps:$4 sm:$0xff]   ;;  %v3642_v38 = vld [vmem:[#allocation8 + $0xa8] ss:$16 sps:$4 sm:$0xff]  }
 0x589   :  { %v731_v41 = vpop.f32.mrb[10].mxu0  ;;  %v3650_v40 = vld [vmem:[#allocation8 + $0xcc] ss:$16 sps:$4 sm:$0xff]  }
 0x58a   :  { %vm734_vm6 = vcmp.ge.f32.partialorder %v729_v39, 0.0  ;;  %v735_v42 = vmul.f32 0.2, %v729_v39  ;;  %v3423_v43 = vpop.f32.mrb[11].mxu0  ;;  %v3645_v41 = vld [vmem:[#allocation8 + $0xc0] ss:$16 sps:$4 sm:$0xff]  }
 0x58b   :  { %v3653_v43 = vld [vmem:[#allocation8 + $0xe4] ss:$16 sps:$4 sm:$0xff]  }
 0x58c   :  { %v736_v44 = vsel %vm734_vm6, %v729_v39, %v735_v42  ;;  %v3647_v39 = vld [vmem:[#allocation8 + $0xc4] ss:$16 sps:$4 sm:$0xff]   ;;  %v3648_v42 = vld [vmem:[#allocation8 + $0xc8] ss:$16 sps:$4 sm:$0xff]  }
 0x58d   :  { %v737_v45 = vpack.c.bf16 %v736_v44, %v736_v44  ;;  %v3656_v44 = vld [vmem:[#allocation8 + $0xec] ss:$16 sps:$4 sm:$0xff]  }
 0x58f   :  { %3441 = vmatmul.mubr.bf16.vlgmr.msra.gmra.mrb[8].mxu1 %v737_v45  ;;  %v3651_v45 = vld [vmem:[#allocation8 + $0xe0] ss:$16 sps:$4 sm:$0xff]  }
 0x590   :  { %3480 = vmatprep.mubr.msk.bf16.mxu1 %vm4007_vm1, %v4006_v0  ;;  %3465 = vmatpush3.bf16.msra.mxu1 %v3601_v48  ;;  %v3658_v48 = vld [vmem:[#allocation13 + $0xc0] sm:$0xff]  }
 0x591   :  { %3466 = vmatprep.subr.bf16.mxu1 %v4006_v0 }
 0x594   :  { %3467 = vmatpush3.bf16.msra.mxu1 %v3602_v49  ;;  %v2995_v49 = vld [vmem:[%s4457_s4 + $0x7] ss:$0 sm:$0xff] }
 0x595   :  { %3468 = vmatprep.subr.bf16.mxu1 %v4006_v0 }
 0x598   :  { %3469 = vmatpush3.bf16.msra.mxu1 %v3603_v50 }
 0x599   :  { %3470 = vmatprep.subr.bf16.mxu1 %v4006_v0 }
 0x59c   :  { %3471 = vmatpush3.bf16.msra.mxu1 %v3604_v51 }
 0x59d   :  { %3472 = vmatprep.subr.bf16.mxu1 %v4006_v0 }
 0x5a0   :  { %3473 = vmatpush3.bf16.msra.mxu1 %v3605_v52 }
 0x5a1   :  { %3474 = vmatprep.subr.bf16.mxu1 %v4006_v0 }
 0x5a4   :  { %3475 = vmatpush3.bf16.msra.mxu1 %v3606_v53 }
 0x5a5   :  { %3476 = vmatprep.subr.bf16.mxu1 %v4006_v0 }
 0x5a8   :  { %3477 = vmatpush3.bf16.msra.mxu1 %v3607_v63  ;;  %v3664_v63 = vld [vmem:[#allocation13 + $0x88] sm:$0xff]  }
 0x5a9   :  { %3478 = vmatprep.subr.bf16.mxu1 %v4006_v0  ;;  %v3621_v0 = vld [vmem:[#allocation8 + $0x40] ss:$16 sps:$4 sm:$0xff]  }
 0x5ac   :  { %3479 = vmatpush3.bf16.msra.mxu1 %v3608_v1  ;;  %v3665_v1 = vld [vmem:[#allocation13 + $0x50] sm:$0xff]  }
 0x5ad   :  { %1335 = vmatprep.subr.bf16.mxu1 %v3614_v4  ;;  %v3668_v4 = vld [vmem:[#allocation13 + $0x90] sm:$0xff]  }
 0x662   :  { %v842_v55 = vpop.f32.mrb[8].mxu1 }
 0x663   :  { %v843_v56 = vadd.f32 %v2977_v54, %v842_v55  ;;  %v3442_v57 = vpop.f32.mrb[9].mxu1 }
 0x664   :  { %v845_v58 = vpop.f32.mrb[10].mxu1  ;;  %v3659_v57 = vld [vmem:[#allocation13] sm:$0xff]  }
 0x665   :  { %vm848_vm7 = vcmp.ge.f32.partialorder %v843_v56, 0.0  ;;  %v849_v59 = vmul.f32 0.2, %v843_v56  ;;  %v3443_v60 = vpop.f32.mrb[11].mxu1  ;;  %v3660_v58 = vld [vmem:[#allocation13 + $0x80] sm:$0xff]  }
 0x666   :  { %v3661_v60 = vld [vmem:[#allocation13 + $0x48] sm:$0xff]  }
 0x667   :  { %v850_v61 = vsel %vm848_vm7, %v843_v56, %v849_v59 }
 0x668   :  { %v851_v62 = vpack.c.bf16 %v850_v61, %v850_v61  ;;  %v3662_v61 = vld [vmem:[#allocation13 + $0xc8] sm:$0xff]  }
 0x66a   :  { %3461 = vmatmul.mubr.bf16.vlgmr.msra.gmra.mrb[12].mxu0 %v851_v62  ;;  %v3663_v62 = vld [vmem:[#allocation13 + $0x8] sm:$0xff]  }
 0x66b   :  { %1295 = vmatpush1.bf16.msra.mxu0 %v3609_v2  ;;  %1326 = vmatprep.mubr.bf16.mxu0 %v4008_v8  ;;  %v3666_v2 = vld [vmem:[#allocation13 + $0xd0] sm:$0xff]  }
 0x66c   :  { %1296 = vmatprep.subr.bf16.mxu0 %v3617_v5  ;;  %v3669_v5 = vld [vmem:[#allocation13 + $0x58] sm:$0xff]  }
 0x66f   :  { %1297 = vmatpush1.bf16.msra.mxu0 %v3615_v6  ;;  %v3670_v6 = vld [vmem:[#allocation13 + $0xd8] sm:$0xff]  }
 0x670   :  { %1298 = vmatprep.subr.bf16.mxu0 %v3623_v7  ;;  %v3671_v7 = vld [vmem:[#allocation13 + $0x18] sm:$0xff]  }
 0x673   :  { %1299 = vmatpush1.bf16.msra.mxu0 %v3621_v0  ;;  %v3674_v0 = vld [vmem:[#allocation13 + $0xe0] sm:$0xff]  }
 0x674   :  { %1300 = vmatprep.subr.bf16.mxu0 %v3629_v10  ;;  %v3675_v10 = vld [vmem:[#allocation13 + $0x20] sm:$0xff]  }
 0x677   :  { %1301 = vmatpush1.bf16.msra.mxu0 %v3627_v12  ;;  %v3677_v12 = vld [vmem:[#allocation13 + $0x68] sm:$0xff]  }
 0x678   :  { %1302 = vmatprep.subr.bf16.mxu0 %v3635_v13  ;;  %v3678_v13 = vld [vmem:[#allocation13 + $0xe8] sm:$0xff]  }
 0x67b   :  { %1303 = vmatpush1.bf16.msra.mxu0 %v3633_v16  ;;  %v3681_v16 = vld [vmem:[#allocation13 + $0x70] sm:$0xff]  }
 0x67c   :  { %1304 = vmatprep.subr.bf16.mxu0 %v3641_v17  ;;  %v3682_v17 = vld [vmem:[#allocation13 + $0xf0] sm:$0xff]  }
 0x67f   :  { %1305 = vmatpush1.bf16.msra.mxu0 %v3639_v18  ;;  %v4336_v18 = vpop.permute.xlu1 %1488 }
 0x680   :  { %1306 = vmatprep.subr.bf16.mxu0 %v3647_v39 }
 0x683   :  { %1307 = vmatpush1.bf16.msra.mxu0 %v3645_v41 }
 0x684   :  { %1308 = vmatprep.subr.bf16.mxu0 %v3653_v43 }
 0x687   :  { %1309 = vmatpush1.bf16.msra.mxu0 %v3651_v45 }
 0x688   :  { %3192 = vmatprep.subr.bf16.mxu0 %v3657_v47 }
 0x73d   :  { %v956_v20 = vpop.f32.mrb[12].mxu0 }
 0x73e   :  { %v957_v21 = vadd.f32 %v2986_v19, %v956_v20  ;;  %v3462_v22 = vpop.f32.mrb[13].mxu0  ;;  %v3683_v19 = vld [vmem:[#allocation13 + $0x30] sm:$0xff]  }
 0x73f   :  { %v959_v23 = vpop.f32.mrb[14].mxu0  ;;  %v3684_v20 = vld [vmem:[#allocation13 + $0xb0] sm:$0xff]   ;;  %v3686_v22 = vld [vmem:[#allocation13 + $0xf8] sm:$0xff]  }
 0x740   :  { %vm962_vm8 = vcmp.ge.f32.partialorder %v957_v21, 0.0  ;;  %v963_v24 = vmul.f32 0.2, %v957_v21  ;;  %v3463_v25 = vpop.f32.mrb[15].mxu0  ;;  %v3687_v23 = vld [vmem:[#allocation13 + $0x38] sm:$0xff]  }
 0x741   :  { %v4338_v25 = vpop.permute.xlu1 %1493 }
 0x742   :  { %v964_v26 = vsel %vm962_vm8, %v957_v21, %v963_v24  ;;  %v3685_v21 = vld [vmem:[#allocation13 + $0x78] sm:$0xff]  }
 0x743   :  { %v965_v28 = vpack.c.bf16 %v964_v26, %v964_v26  ;;  %v3688_v24 = vld [vmem:[#allocation13 + $0xb8] sm:$0xff]   ;;  %v3036_v26 = vld [vmem:[%s4460_s7] ss:$0 sm:$0xff] }
 0x745   :  { %3481 = vmatmul.mubr.bf16.vlgmr.msra.gmra.mrb[12].mxu1 %v965_v28  ;;  %v3693_v28 = vld [vmem:[#allocation13 + $0x140] sm:$0xff]  }
 0x746   :  { %1336 = vmatpush1.bf16.msra.mxu1 %v3612_v27  ;;  %1367 = vmatprep.mubr.bf16.mxu1 %v4008_v8  ;;  %v3672_v8 = vld [vmem:[#allocation13 + $0x98] sm:$0xff]   ;;  %v4343_v27 = vpop.permute.xlu0 %1483 }
 0x747   :  { %1337 = vmatprep.subr.bf16.mxu1 %v3620_v29  ;;  %v3694_v29 = vld [vmem:[#allocation13 + $0x1c0] sm:$0xff]  }
 0x74a   :  { %1338 = vmatpush1.bf16.msra.mxu1 %v3618_v30  ;;  %v1502_v30 = vmul.f32 %v3036_v26, %v4336_v18 }
 0x74b   :  { %1339 = vmatprep.subr.bf16.mxu1 %v3626_v31  ;;  %v1501_v31 = vmul.f32 %v3036_v26, %v4343_v27 }
 0x74e   :  { %1340 = vmatpush1.bf16.msra.mxu1 %v3624_v32  ;;  %v1473_v32 = vld [vmem:[#allocation5 + $0x8] sm:$0xff] }
 0x74f   :  { %1341 = vmatprep.subr.bf16.mxu1 %v3632_v33  ;;  %v4347_v33 = vpop.permute.xlu1 %1498 }
 0x752   :  { %1342 = vmatpush1.bf16.msra.mxu1 %v3630_v34  ;;  %v1472_v34 = vld [vmem:[#allocation5] sm:$0xff] }
 0x753   :  { %1343 = vmatprep.subr.bf16.mxu1 %v3638_v35  ;;  %v1503_v35 = vmul.f32 %v3036_v26, %v4338_v25 }
 0x755   :  { %v1507_v41 = vadd.f32 %v1503_v35, %v1472_v34 }
 0x756   :  { %1344 = vmatpush1.bf16.msra.mxu1 %v3636_v36  ;;  %v1506_v36 = vadd.f32 %v1502_v30, %v1473_v32 }
 0x757   :  { %1345 = vmatprep.subr.bf16.mxu1 %v3644_v37  ;;  %v1504_v37 = vmul.f32 %v3036_v26, %v4347_v33  ;;  %vm1511_vm13 = vcmp.ge.f32.partialorder %v1507_v41, 0.0  ;;  %v1114_v26 = vlaneseq }
 0x758   :  { %v1514_v39 = vmul.f32 0.2, %v1506_v36  ;;  %vm1510_vm10 = vcmp.ge.f32.partialorder %v1506_v36, 0.0 }
 0x759   :  { %v1115_v30 = vshrl.u32 %v1114_v26, 7 }
 0x75a   :  { %1346 = vmatpush1.bf16.msra.mxu1 %v3642_v38  ;;  %v1505_v38 = vadd.f32 %v1501_v31, %v1472_v34  ;;  %v1518_v45 = vsel %vm1510_vm10, %v1506_v36, %v1514_v39 }
 0x75b   :  { %1347 = vmatprep.subr.bf16.mxu1 %v3650_v40  ;;  %v1508_v40 = vadd.f32 %v1504_v37, %v1473_v32  ;;  %v4009_v32 = vmov 1966171168   ;;  %v4363_v35 = vsub.s32 0, %v1115_v30  ;;  %v1124_v36 = vsub.s32 2, %v1115_v30  ;;  %v1112_v37 = vld [vmem:[#allocation10] sm:$0xf] }
 0x75c   :  { %vm1509_vm11 = vcmp.ge.f32.partialorder %v1505_v38, 0.0  ;;  %v1378_v34 = vunpack.c.l.s4 %v4009_v32  ;;  %v1128_v39 = vsub.s32 3, %v1115_v30 }
 0x75d   :  { %v1516_v43 = vmul.f32 0.2, %v1508_v40  ;;  %vm1512_vm12 = vcmp.ge.f32.partialorder %v1508_v40, 0.0 }
 0x75e   :  { %1348 = vmatpush1.bf16.msra.mxu1 %v3648_v42  ;;  %v1513_v42 = vmul.f32 0.2, %v1505_v38 }
 0x75f   :  { %1349 = vmatprep.subr.bf16.mxu1 %v3656_v44  ;;  %v1515_v44 = vmul.f32 0.2, %v1507_v41 }
 0x762   :  { %1350 = vmatpush1.bf16.msra.mxu1 %v3654_v46  ;;  %v1517_v46 = vsel %vm1509_vm11, %v1505_v38, %v1513_v42  ;;  %v1120_v38 = vsub.s32 1, %v1115_v30  ;;  %v1125_v42 = vrot.slane %v1112_v37, %v1124_v36 }
 0x763   :  { %3220 = vmatprep.subr.bf16.mxu1 %v3658_v48  ;;  %v1521_v47 = vadd.f32 %v1518_v45, %v1517_v46  ;;  %v1520_v48 = vsel %vm1512_vm12, %v1508_v40, %v1516_v43  ;;  %v1379_v40 = vunpack.c.0.s8 %v1378_v34 }
 0x764   :  { %v1121_v43 = vrot.slane %v1112_v37, %v1120_v38 }
 0x818   :  { %v1070_v50 = vpop.f32.mrb[12].mxu1 }
 0x819   :  { %v1071_v51 = vadd.f32 %v2995_v49, %v1070_v50  ;;  %v3482_v52 = vpop.f32.mrb[13].mxu1  ;;  %v1519_v49 = vsel %vm1511_vm13, %v1507_v41, %v1515_v44  ;;  %v1117_v41 = vrot.slane %v1112_v37, %v4363_v35  ;;  %v1129_v44 = vrot.slane %v1112_v37, %v1128_v39 }
 0x81a   :  { %v1073_v53 = vpop.f32.mrb[14].mxu1  ;;  %v1528_v50 = vadd.f32 %v1520_v48, %v1519_v49 }
 0x81b   :  { %vm1076_vm9 = vcmp.ge.f32.partialorder %v1071_v51, 0.0  ;;  %v1077_v54 = vmul.f32 0.2, %v1071_v51  ;;  %v3483_v55 = vpop.f32.mrb[15].mxu1 }
 0x81c   :  { %v1529_v52 = vrot.slane %v1528_v50, 4 }
 0x81d   :  { %v1078_v56 = vsel %vm1076_vm9, %v1071_v51, %v1077_v54  ;;  %v1522_v51 = vrot.slane %v1521_v47, 4 }
 0x81e   :  { %v1079_v59 = vpack.c.bf16 %v1078_v56, %v1078_v56  ;;  %v1530_v54 = vadd.f32 %v1529_v52, %v1528_v50 }
 0x81f   :  { %v1523_v53 = vadd.f32 %v1522_v51, %v1521_v47 }
 0x820   :  { %1327 = vmatmul.mubr.bf16.vlgmr.msra.gmra.mrb[16].mxu0 %v1079_v59  ;;  %1368 = vmatmul.mubr.bf16.vlgmr.msra.gmra.mrb[16].mxu1 %v1079_v59  ;;  %v1531_v56 = vrot.slane %v1530_v54, 2 }
 0x821   :  { %3193 = vmatpush3.bf16.msra.mxu0 %v3659_v57  ;;  %3221 = vmatpush3.bf16.msra.mxu1 %v3660_v58  ;;  %v1524_v55 = vrot.slane %v1523_v53, 2 }
 0x822   :  { %3194 = vmatprep.subr.bf16.mxu0 %v3661_v60  ;;  %3222 = vmatprep.subr.bf16.mxu1 %v3662_v61  ;;  %v1532_v58 = vadd.f32 %v1531_v56, %v1530_v54 }
 0x823   :  { %v1525_v57 = vadd.f32 %v1524_v55, %v1523_v53 }
 0x824   :  { %v1533_v60 = vrot.slane %v1532_v58, 1 }
 0x825   :  { %3195 = vmatpush3.bf16.msra.mxu0 %v3663_v62  ;;  %3223 = vmatpush3.bf16.msra.mxu1 %v3664_v63  ;;  %v1526_v59 = vrot.slane %v1525_v57, 1 }
 0x826   :  { %3196 = vmatprep.subr.bf16.mxu0 %v3665_v1  ;;  %3224 = vmatprep.subr.bf16.mxu1 %v3666_v2  ;;  %v1534_v62 = vadd.f32 %v1533_v60, %v1532_v58 }
 0x827   :  { %v1527_v61 = vadd.f32 %v1526_v59, %v1525_v57 }
 0x828   :  { %v1537_v1 = vmul.f32 0.0625, %v1534_v62 }
 0x829   :  { %3197 = vmatpush3.bf16.msra.mxu0 %v3667_v3  ;;  %3225 = vmatpush3.bf16.msra.mxu1 %v3668_v4  ;;  %v1536_v63 = vmul.f32 0.0625, %v1527_v61 }
 0x82a   :  { %3198 = vmatprep.subr.bf16.mxu0 %v3669_v5  ;;  %3226 = vmatprep.subr.bf16.mxu1 %v3670_v6  ;;  %v4353_v4 = vsub.f32 %v1519_v49, %v1537_v1  ;;  %v4355_v5 = vsub.f32 %v1520_v48, %v1537_v1 }
 0x82b   :  { %v1538_v2 = vsub.f32 %v1517_v46, %v1536_v63  ;;  %v4351_v3 = vsub.f32 %v1518_v45, %v1536_v63  ;;  %v4366_v45 = vsub.s32 %v1379_v40, %v1115_v30 }
 0x82d   :  { %3199 = vmatpush3.bf16.msra.mxu0 %v3671_v7  ;;  %3227 = vmatpush3.bf16.msra.mxu1 %v3672_v8  ;;  %v1542_v6 = vmul.f32 %v1538_v2, %v1538_v2  ;;  %v1543_v7 = vmul.f32 %v4351_v3, %v4351_v3  ;;  %v1544_v8 = vmul.f32 %v4353_v4, %v4353_v4 }
 0x82e   :  { %3200 = vmatprep.subr.bf16.mxu0 %v3673_v9  ;;  %3228 = vmatprep.subr.bf16.mxu1 %v3674_v0  ;;  %v1545_v9 = vmul.f32 %v4355_v5, %v4355_v5 }
 0x82f   :  { %v1546_v0 = vadd.f32 %v1543_v7, %v1542_v6 }
 0x831   :  { %3201 = vmatpush3.bf16.msra.mxu0 %v3675_v10  ;;  %3229 = vmatpush3.bf16.msra.mxu1 %v3676_v11  ;;  %v1553_v10 = vadd.f32 %v1545_v9, %v1544_v8  ;;  %v1547_v11 = vrot.slane %v1546_v0, 4 }
 0x832   :  { %3202 = vmatprep.subr.bf16.mxu0 %v3677_v12  ;;  %3230 = vmatprep.subr.bf16.mxu1 %v3678_v13 }
 0x833   :  { %v1554_v12 = vrot.slane %v1553_v10, 4  ;;  %v1548_v13 = vadd.f32 %v1547_v11, %v1546_v0 }
 0x835   :  { %3203 = vmatpush3.bf16.msra.mxu0 %v3679_v14  ;;  %3231 = vmatpush3.bf16.msra.mxu1 %v3680_v15  ;;  %v1555_v14 = vadd.f32 %v1554_v12, %v1553_v10  ;;  %v1549_v15 = vrot.slane %v1548_v13, 2 }
 0x836   :  { %3204 = vmatprep.subr.bf16.mxu0 %v3681_v16  ;;  %3232 = vmatprep.subr.bf16.mxu1 %v3682_v17 }
 0x837   :  { %v1556_v16 = vrot.slane %v1555_v14, 2  ;;  %v1550_v17 = vadd.f32 %v1549_v15, %v1548_v13 }
 0x839   :  { %3205 = vmatpush3.bf16.msra.mxu0 %v3683_v19  ;;  %3233 = vmatpush3.bf16.msra.mxu1 %v3684_v20  ;;  %v1557_v19 = vadd.f32 %v1556_v16, %v1555_v14  ;;  %v1551_v20 = vrot.slane %v1550_v17, 1 }
 0x83a   :  { %3206 = vmatprep.subr.bf16.mxu0 %v3685_v21  ;;  %3234 = vmatprep.subr.bf16.mxu1 %v3686_v22 }
 0x83b   :  { %v1558_v21 = vrot.slane %v1557_v19, 1  ;;  %v1552_v22 = vadd.f32 %v1551_v20, %v1550_v17 }
 0x83d   :  { %3207 = vmatpush3.bf16.msra.mxu0 %v3687_v23  ;;  %3235 = vmatpush3.bf16.msra.mxu1 %v3688_v24  ;;  %v1559_v23 = vadd.f32 %v1558_v21, %v1557_v19  ;;  %v1560_v24 = vmul.f32 0.0625, %v1552_v22 }
 0x83e   :  { %3248 = vmatprep.subr.bf16.mxu0 %v3693_v28  ;;  %3276 = vmatprep.subr.bf16.mxu1 %v3694_v29 }
 0x83f   :  { %v1561_v28 = vmul.f32 0.0625, %v1559_v23  ;;  %v1562_v29 = vadd.f32 1e-05, %v1560_v24 }
 0x841   :  { %v1563_v31 = vadd.f32 1e-05, %v1561_v28  ;;  %3775 = vrsqrt.f32 %v1562_v29 }
 0x843   :  { %3777 = vrsqrt.f32 %v1563_v31 }
 0x84b   :  { %v3776_v48 = vpop.eup %3775 }
 0x84c   :  { %v1566_v61 = vmul.f32 %v3776_v48, %v1538_v2  ;;  %v1567_v13 = vmul.f32 %v3776_v48, %v4351_v3  ;;  %v3705_v48 = vld [vmem:[#allocation13 + $0x148] sm:$0xff]  }
 0x84d   :  { %v3778_v1 = vpop.eup %3777 }
 0x84e   :  { %v1568_v16 = vmul.f32 %v3778_v1, %v4353_v4  ;;  %v1569_v21 = vmul.f32 %v3778_v1, %v4355_v5  ;;  %v3710_v1 = vld [vmem:[#allocation13 + $0x1d0] sm:$0xff]  }
 0x8f3   :  { %v1328_v46 = vpop.f32.mrb[16].mxu0  ;;  %v1369_v47 = vpop.f32.mrb[16].mxu1 }
 0x8f4   :  { %v1329_v49 = vadd.f32 %v1328_v46, %v1117_v41  ;;  %v1370_v50 = vadd.f32 %v1369_v47, %v1125_v42  ;;  %v1330_v51 = vpop.f32.mrb[17].mxu0  ;;  %v1371_v52 = vpop.f32.mrb[17].mxu1  ;;  %v3700_v47 = vld [vmem:[#allocation13 + $0x180] sm:$0xff]  }
 0x8f5   :  { %v1331_v53 = vadd.f32 %v1330_v51, %v1121_v43  ;;  %v1372_v54 = vadd.f32 %v1371_v52, %v1129_v44  ;;  %v1332_v55 = vpop.f32.mrb[18].mxu0  ;;  %v1373_v56 = vpop.f32.mrb[18].mxu1  ;;  %v3699_v43 = vld [vmem:[#allocation13 + $0x100] sm:$0xff]   ;;  %v3706_v51 = vld [vmem:[#allocation13 + $0x1c8] sm:$0xff]  }
 0x8f6   :  { %v1383_v57 = vrot.slane %v1329_v49, %v4366_v45  ;;  %v4370_v58 = vrot.slane %v1370_v50, %v4366_v45  ;;  %v1333_v59 = vpop.f32.mrb[19].mxu0  ;;  %v1374_v60 = vpop.f32.mrb[19].mxu1  ;;  %v3707_v56 = vld [vmem:[#allocation13 + $0x108] sm:$0xff]  }
 0x8f7   :  { %v1406_v62 = vrot.slane %v1331_v53, %v4366_v45  ;;  %v4374_v63 = vrot.slane %v1372_v54, %v4366_v45  ;;  %v3709_v59 = vld [vmem:[#allocation13 + $0x150] sm:$0xff]  }
 0x8f8   :  { %v1384_v6 = vcombine.high %v1383_v57, %v1383_v57  ;;  %v1391_v7 = vrot.slane %v1383_v57, %v4366_v45  ;;  %v1430_v8 = vcombine.high %v4370_v58, %v4370_v58  ;;  %v1437_v9 = vrot.slane %v4370_v58, %v4366_v45  ;;  %v3708_v57 = vld [vmem:[#allocation13 + $0x188] sm:$0xff]  }
 0x8f9   :  { %v1407_v0 = vcombine.high %v1406_v62, %v1406_v62  ;;  %v1414_v10 = vrot.slane %v1406_v62, %v4366_v45  ;;  %v1453_v2 = vcombine.high %v4374_v63, %v4374_v63  ;;  %v1460_v11 = vrot.slane %v4374_v63, %v4366_v45 }
 0x8fa   :  { %v1398_v12 = vrot.slane %v1384_v6, %v4366_v45  ;;  %v1573_v14 = vrot.slane %v1391_v7, %v4363_v35  ;;  %v4390_v15 = vrot.slane %v1430_v8, %v4366_v45 }
 0x8fb   :  { %v1421_v17 = vrot.slane %v1407_v0, %v4366_v45  ;;  %v1587_v19 = vrot.slane %v1414_v10, %v4363_v35  ;;  %v4396_v20 = vrot.slane %v1453_v2, %v4366_v45  ;;  %v3715_v0 = vld [vmem:[#allocation13 + $0x110] sm:$0xff]  }
 0x8fc   :  { %v1577_v22 = vrot.slane %v1398_v12, %v4363_v35  ;;  %v1580_v23 = vmul.f32 %v1573_v14, %v1566_v61  ;;  %v1581_v3 = vmul.f32 %v1573_v14, %v1567_v13  ;;  %v3716_v12 = vld [vmem:[#allocation13 + $0x190] sm:$0xff]   ;;  %v3721_v13 = vld [vmem:[#allocation13 + $0x158] sm:$0xff]  }
 0x8fd   :  { %v1591_v24 = vrot.slane %v1421_v17, %v4363_v35  ;;  %v3722_v14 = vld [vmem:[#allocation13 + $0x1d8] sm:$0xff]  }
 0x8fe   :  { %v1582_v26 = vmul.f32 %v1577_v22, %v1568_v16  ;;  %v1583_v28 = vmul.f32 %v1577_v22, %v1569_v21  ;;  %v1594_v29 = vadd.f32 %v1587_v19, %v1580_v23  ;;  %v1595_v30 = vadd.f32 %v1587_v19, %v1581_v3  ;;  %v3723_v22 = vld [vmem:[#allocation13 + $0x118] sm:$0xff]  }
 0x900   :  { %v1596_v4 = vadd.f32 %v1591_v24, %v1582_v26  ;;  %v1597_v31 = vadd.f32 %v1591_v24, %v1583_v28  ;;  %v1614_v32 = vcombine.high %v1594_v29, %v1594_v29  ;;  %v1615_v34 = vcombine.high %v1595_v30, %v1595_v30  ;;  %1623 = vst [vmem:[#allocation2 + $0x9] sm:$0xf] %v1594_v29  ;;  %v3724_v28 = vld [vmem:[#allocation13 + $0x198] sm:$0xff]   ;;  %v3725_v29 = vld [vmem:[#allocation13 + $0x160] sm:$0xff]  }
 0x901   :  { %1625 = vst [vmem:[#allocation2 + $0x19] sm:$0xf] %v1595_v30  ;;  %v3726_v30 = vld [vmem:[#allocation13 + $0x1e0] sm:$0xff]  }
 0x902   :  { %v1616_v36 = vcombine.high %v1596_v4, %v1596_v4  ;;  %v1617_v37 = vcombine.high %v1597_v31, %v1597_v31  ;;  %1624 = vst [vmem:[#allocation2 + $0x11] sm:$0xf] %v1614_v32  ;;  %1626 = vst [vmem:[#allocation2 + $0x21] sm:$0xf] %v1615_v34  ;;  %v3729_v32 = vld [vmem:[#allocation13 + $0x168] sm:$0xff]  }
 0x903   :  { %1627 = vst [vmem:[#allocation2 + $0x39] sm:$0xf] %v1596_v4  ;;  %1629 = vst [vmem:[#allocation2 + $0x49] sm:$0xf] %v1597_v31  ;;  %v3727_v4 = vld [vmem:[#allocation13 + $0x120] sm:$0xff]   ;;  %v3730_v34 = vld [vmem:[#allocation13 + $0x1e8] sm:$0xff]  }
 0x904   :  { %1628 = vst [vmem:[#allocation2 + $0x41] sm:$0xf] %v1616_v36  ;;  %1630 = vst [vmem:[#allocation2 + $0x51] sm:$0xf] %v1617_v37  ;;  %v3728_v31 = vld [vmem:[#allocation13 + $0x1a0] sm:$0xff]   ;;  %v3731_v36 = vld [vmem:[#allocation13 + $0x128] sm:$0xff]  }
 0x905   :  { %v3732_v37 = vld [vmem:[#allocation13 + $0x1a8] sm:$0xff]  }
 0x907   :  { %v3689_v5 = vld [vmem:[#allocation2 + $0x1] ss:$8 sps:$4 sm:$0xff]  }
 0x908   :  { %v3695_v42 = vld [vmem:[#allocation2] ss:$8 sps:$4 sm:$0xff]  }
 0x909   :  { %v3690_v38 = vld [vmem:[#allocation2 + $0x11] ss:$8 sps:$4 sm:$0xff]   ;;  %v3697_v49 = vld [vmem:[#allocation2 + $0x2] ss:$8 sps:$4 sm:$0xff]  }
 0x90a   :  { %v3691_v39 = vld [vmem:[#allocation2 + $0x8] ss:$8 sps:$4 sm:$0xff]   ;;  %v3692_v40 = vld [vmem:[#allocation2 + $0x18] ss:$8 sps:$4 sm:$0xff]   ;;  %v1849_v41 = vpack.c.bf16 %v3690_v38, %v3689_v5 }
 0x90b   :  { %v1851_v44 = vpack.c.bf16 %v3692_v40, %v3691_v39  ;;  %v3696_v46 = vld [vmem:[#allocation2 + $0x10] ss:$8 sps:$4 sm:$0xff]   ;;  %v3702_v55 = vld [vmem:[#allocation2 + $0x41] ss:$8 sps:$4 sm:$0xff]  }
 0x90c   :  { %2481 = vmatprep.mubr.bf16.mxu0 %v1849_v41  ;;  %v3698_v50 = vld [vmem:[#allocation2 + $0x12] ss:$8 sps:$4 sm:$0xff]   ;;  %v1848_v52 = vpack.c.bf16 %v3696_v46, %v3695_v42  ;;  %v3712_v8 = vld [vmem:[#allocation2 + $0x40] ss:$8 sps:$4 sm:$0xff]  }
 0x90d   :  { %2530 = vmatprep.mubr.bf16.mxu1 %v1851_v44  ;;  %v1850_v53 = vpack.c.bf16 %v3698_v50, %v3697_v49  ;;  %v3701_v54 = vld [vmem:[#allocation2 + $0x31] ss:$8 sps:$4 sm:$0xff]   ;;  %v3714_v2 = vld [vmem:[#allocation2 + $0x42] ss:$8 sps:$4 sm:$0xff]  }
 0x90e   :  { %2482 = vmatmul.mubr.bf16.vlgmr.msra.gmra.mrb[20].mxu0 %v1848_v52  ;;  %v1858_v60 = vpack.c.bf16 %v3702_v55, %v3701_v54  ;;  %v3703_v61 = vld [vmem:[#allocation2 + $0x38] ss:$8 sps:$4 sm:$0xff]   ;;  %v3704_v62 = vld [vmem:[#allocation2 + $0x48] ss:$8 sps:$4 sm:$0xff]  }
 0x90f   :  { %2531 = vmatmul.mubr.bf16.vlgmr.msra.gmra.mrb[20].mxu1 %v1850_v53  ;;  %3249 = vmatpush3.bf16.msra.mxu0 %v3699_v43  ;;  %v3711_v6 = vld [vmem:[#allocation2 + $0x30] ss:$8 sps:$4 sm:$0xff]   ;;  %v1860_v7 = vpack.c.bf16 %v3704_v62, %v3703_v61  ;;  %v3720_v24 = vld [vmem:[#allocation2 + $0x21] ss:$8 sps:$4 sm:$0xff]  }
 0x910   :  { %3277 = vmatpush3.bf16.msra.mxu1 %v3700_v47  ;;  %3250 = vmatprep.subr.bf16.mxu0 %v3705_v48  ;;  %v3713_v10 = vld [vmem:[#allocation2 + $0x32] ss:$8 sps:$4 sm:$0xff]   ;;  %v1857_v16 = vpack.c.bf16 %v3712_v8, %v3711_v6  ;;  %v3733_v5 = vld [vmem:[#allocation13 + $0x170] sm:$0xff]  }
 0x911   :  { %2489 = vmatprep.mubr.bf16.mxu0 %v1858_v60  ;;  %3278 = vmatprep.subr.bf16.mxu1 %v3706_v51  ;;  %v3717_v17 = vld [vmem:[#allocation2 + $0xa] ss:$8 sps:$4 sm:$0xff]   ;;  %v3718_v19 = vld [vmem:[#allocation2 + $0x1a] ss:$8 sps:$4 sm:$0xff]   ;;  %v1859_v21 = vpack.c.bf16 %v3714_v2, %v3713_v10 }
 0x912   :  { %2538 = vmatprep.mubr.bf16.mxu1 %v1860_v7  ;;  %v1853_v23 = vpack.c.bf16 %v3718_v19, %v3717_v17  ;;  %v3719_v3 = vld [vmem:[#allocation2 + $0x11] ss:$8 sps:$4 sm:$0xff]   ;;  %v3734_v38 = vld [vmem:[#allocation13 + $0x1f0] sm:$0xff]  }
 0x913   :  { %3251 = vmatpush3.bf16.msra.mxu0 %v3707_v56  ;;  %v1855_v26 = vpack.c.bf16 %v3720_v24, %v3719_v3  ;;  %v3735_v39 = vld [vmem:[#allocation13 + $0x130] sm:$0xff]   ;;  %v3737_v41 = vld [vmem:[#allocation13 + $0x178] sm:$0xff]   ;;  %v3745_v46 = vld [vmem:[#allocation13 + $0x200] sm:$0xff]  }
 0x914   :  { %3279 = vmatpush3.bf16.msra.mxu1 %v3708_v57  ;;  %3252 = vmatprep.subr.bf16.mxu0 %v3709_v59  ;;  %v3736_v40 = vld [vmem:[#allocation13 + $0x1b0] sm:$0xff]   ;;  %v3738_v42 = vld [vmem:[#allocation13 + $0x1f8] sm:$0xff]   ;;  %v3742_v48 = vld [vmem:[#allocation2 + $0x19] ss:$8 sps:$4 sm:$0xff]  }
 0x915   :  { %3280 = vmatprep.subr.bf16.mxu1 %v3710_v1  ;;  %v3739_v43 = vld [vmem:[#allocation13 + $0x138] sm:$0xff]   ;;  %v3744_v50 = vld [vmem:[#allocation2 + $0x20] ss:$8 sps:$4 sm:$0xff]  }
 0x916   :  { %2490 = vmatmul.mubr.bf16.gmra.mrb[24].mxu0 %v1857_v16  ;;  %v3740_v44 = vld [vmem:[#allocation13 + $0x1b8] sm:$0xff]   ;;  %v3746_v51 = vld [vmem:[#allocation2 + $0x3a] ss:$8 sps:$4 sm:$0xff]   ;;  %v3755_v61 = vld [vmem:[#allocation13 + $0x210] sm:$0xff]  }
 0x917   :  { %2539 = vmatmul.mubr.bf16.gmra.mrb[24].mxu1 %v1859_v21  ;;  %3253 = vmatpush3.bf16.msra.mxu0 %v3715_v0  ;;  %v3741_v47 = vld [vmem:[#allocation2 + $0x9] ss:$8 sps:$4 sm:$0xff]   ;;  %v3750_v59 = vld [vmem:[#allocation13 + $0x208] sm:$0xff]  }
 0x918   :  { %3281 = vmatpush3.bf16.msra.mxu1 %v3716_v12  ;;  %2579 = vmatprep.mubr.bf16.mxu0 %v1853_v23  ;;  %v3743_v49 = vld [vmem:[#allocation2 + $0x10] ss:$8 sps:$4 sm:$0xff]   ;;  %v3748_v53 = vld [vmem:[#allocation2 + $0x41] ss:$8 sps:$4 sm:$0xff]   ;;  %v1852_v55 = vpack.c.bf16 %v3742_v48, %v3741_v47 }
 0x919   :  { %3254 = vmatprep.subr.bf16.mxu0 %v3721_v13  ;;  %3282 = vmatprep.subr.bf16.mxu1 %v3722_v14  ;;  %v3747_v52 = vld [vmem:[#allocation2 + $0x4a] ss:$8 sps:$4 sm:$0xff]   ;;  %v1854_v56 = vpack.c.bf16 %v3744_v50, %v3743_v49  ;;  %v3751_v62 = vld [vmem:[#allocation2 + $0x39] ss:$8 sps:$4 sm:$0xff]  }
 0x91a   :  { %2628 = vmatprep.mubr.bf16.mxu1 %v1855_v26  ;;  %v3749_v54 = vld [vmem:[#allocation2 + $0x51] ss:$8 sps:$4 sm:$0xff]   ;;  %v1862_v57 = vpack.c.bf16 %v3747_v52, %v3746_v51  ;;  %v3753_v6 = vld [vmem:[#allocation2 + $0x40] ss:$8 sps:$4 sm:$0xff]  }
 0x91b   :  { %3255 = vmatpush3.bf16.msra.mxu0 %v3723_v22  ;;  %v1864_v60 = vpack.c.bf16 %v3749_v54, %v3748_v53  ;;  %v3752_v1 = vld [vmem:[#allocation2 + $0x49] ss:$8 sps:$4 sm:$0xff]   ;;  %v3759_v14 = vld [vmem:[#allocation13 + $0x220] sm:$0xff]   ;;  %v3760_v16 = vld [vmem:[#allocation13 + $0x228] sm:$0xff]  }
 0x91c   :  { %3283 = vmatpush3.bf16.msra.mxu1 %v3724_v28  ;;  %3256 = vmatprep.subr.bf16.mxu0 %v3725_v29  ;;  %v3754_v7 = vld [vmem:[#allocation2 + $0x50] ss:$8 sps:$4 sm:$0xff]   ;;  %v3757_v0 = vld [vmem:[#allocation2 + $0x22] ss:$8 sps:$4 sm:$0xff]   ;;  %v1861_v10 = vpack.c.bf16 %v3752_v1, %v3751_v62 }
 0x91d   :  { %3284 = vmatprep.subr.bf16.mxu1 %v3726_v30  ;;  %v3756_v8 = vld [vmem:[#allocation2 + $0x12] ss:$8 sps:$4 sm:$0xff]   ;;  %v1863_v2 = vpack.c.bf16 %v3754_v7, %v3753_v6  ;;  %v3761_v17 = vld [vmem:[#allocation13 + $0x230] sm:$0xff]   ;;  %v3765_v3 = vld [vmem:[%s4464_s11] sm:$0xff]  }
 0x91e   :  { %v1856_v12 = vpack.c.bf16 %v3757_v0, %v3756_v8  ;;  %v3758_v13 = vld [vmem:[#allocation13 + $0x218] sm:$0xff]   ;;  %v3763_v21 = vld [vmem:[#allocation2 + $0x42] ss:$8 sps:$4 sm:$0xff]   ;;  %v3037_v29 = vld [vmem:[#allocation14] ss:$0 sm:$0xff] }
 0x91f   :  { %3257 = vmatpush3.bf16.msra.mxu0 %v3727_v4  ;;  %v3762_v19 = vld [vmem:[#allocation13 + $0x238] sm:$0xff]   ;;  %v3766_v24 = vld [vmem:[%s4464_s11 + $0x8] sm:$0xff]   ;;  %v3769_v50 = vld [vmem:[%s4464_s11 + $0x20] sm:$0xff]  }
 0x920   :  { %3285 = vmatpush3.bf16.msra.mxu1 %v3728_v31  ;;  %3258 = vmatprep.subr.bf16.mxu0 %v3729_v32  ;;  %v3764_v22 = vld [vmem:[#allocation2 + $0x52] ss:$8 sps:$4 sm:$0xff]   ;;  %v3770_v62 = vld [vmem:[%s4464_s11 + $0x28] sm:$0xff]  }
 0x921   :  { %3286 = vmatprep.subr.bf16.mxu1 %v3730_v34  ;;  %v1865_v23 = vpack.c.bf16 %v3764_v22, %v3763_v21  ;;  %v3767_v4 = vld [vmem:[%s4464_s11 + $0x10] sm:$0xff]   ;;  %v3772_v0 = vld [vmem:[%s4464_s11 + $0x38] sm:$0xff]  }
 0x922   :  { %v3771_v8 = vld [vmem:[%s4464_s11 + $0x30] sm:$0xff]  }
 0x923   :  { %3259 = vmatpush3.bf16.msra.mxu0 %v3731_v36 }
 0x924   :  { %3287 = vmatpush3.bf16.msra.mxu1 %v3732_v37  ;;  %3260 = vmatprep.subr.bf16.mxu0 %v3733_v5 }
 0x925   :  { %3288 = vmatprep.subr.bf16.mxu1 %v3734_v38 }
 0x927   :  { %3261 = vmatpush3.bf16.msra.mxu0 %v3735_v39 }
 0x928   :  { %3289 = vmatpush3.bf16.msra.mxu1 %v3736_v40  ;;  %3262 = vmatprep.subr.bf16.mxu0 %v3737_v41 }
 0x929   :  { %3290 = vmatprep.subr.bf16.mxu1 %v3738_v42  ;;  %v3768_v42 = vld [vmem:[%s4464_s11 + $0x18] sm:$0xff]  }
 0x92b   :  { %3263 = vmatpush3.bf16.msra.mxu0 %v3739_v43 }
 0x92c   :  { %3291 = vmatpush3.bf16.msra.mxu1 %v3740_v44  ;;  %3484 = vmatprep.subr.bf16.mxu0 %v3745_v46 }
 0x92d   :  { %3504 = vmatprep.subr.bf16.mxu1 %v3765_v3 }
 0x92e   :  { %2580 = vmatmul.mubr.bf16.vlgmr.msra.gmra.mrb[28].mxu0 %v1852_v55 }
 0x92f   :  { %2629 = vmatmul.mubr.bf16.vlgmr.msra.gmra.mrb[28].mxu1 %v1854_v56  ;;  %2587 = vmatprep.mubr.bf16.mxu0 %v1862_v57 }
 0x930   :  { %2636 = vmatprep.mubr.bf16.mxu1 %v1864_v60  ;;  %3485 = vmatpush3.bf16.msra.mxu0 %v3745_v46 }
 0x931   :  { %3486 = vmatprep.subr.bf16.mxu0 %v3750_v59  ;;  %3505 = vmatpush3.bf16.msra.mxu1 %v3765_v3 }
 0x932   :  { %3506 = vmatprep.subr.bf16.mxu1 %v3766_v24 }
 0x934   :  { %3487 = vmatpush3.bf16.msra.mxu0 %v3750_v59 }
 0x935   :  { %3488 = vmatprep.subr.bf16.mxu0 %v3755_v61  ;;  %3507 = vmatpush3.bf16.msra.mxu1 %v3766_v24 }
 0x936   :  { %2588 = vmatmul.mubr.bf16.gmra.mrb[32].mxu0 %v1861_v10  ;;  %3508 = vmatprep.subr.bf16.mxu1 %v3767_v4 }
 0x937   :  { %2637 = vmatmul.mubr.bf16.gmra.mrb[32].mxu1 %v1863_v2  ;;  %3500 = vmatprep.mubr.bf16.mxu0 %v1856_v12 }
 0x938   :  { %3489 = vmatpush3.bf16.msra.mxu0 %v3755_v61 }
 0x939   :  { %3490 = vmatprep.subr.bf16.mxu0 %v3758_v13  ;;  %3509 = vmatpush3.bf16.msra.mxu1 %v3767_v4 }
 0x93a   :  { %3510 = vmatprep.subr.bf16.mxu1 %v3768_v42 }
 0x93c   :  { %3491 = vmatpush3.bf16.msra.mxu0 %v3758_v13 }
 0x93d   :  { %3492 = vmatprep.subr.bf16.mxu0 %v3759_v14  ;;  %3511 = vmatpush3.bf16.msra.mxu1 %v3768_v42 }
 0x93e   :  { %3512 = vmatprep.subr.bf16.mxu1 %v3769_v50 }
 0x940   :  { %3493 = vmatpush3.bf16.msra.mxu0 %v3759_v14 }
 0x941   :  { %3494 = vmatprep.subr.bf16.mxu0 %v3760_v16  ;;  %3513 = vmatpush3.bf16.msra.mxu1 %v3769_v50 }
 0x942   :  { %3514 = vmatprep.subr.bf16.mxu1 %v3770_v62 }
 0x944   :  { %3495 = vmatpush3.bf16.msra.mxu0 %v3760_v16 }
 0x945   :  { %3496 = vmatprep.subr.bf16.mxu0 %v3761_v17  ;;  %3515 = vmatpush3.bf16.msra.mxu1 %v3770_v62 }
 0x946   :  { %3516 = vmatprep.subr.bf16.mxu1 %v3771_v8 }
 0x948   :  { %3497 = vmatpush3.bf16.msra.mxu0 %v3761_v17 }
 0x949   :  { %3498 = vmatprep.subr.bf16.mxu0 %v3762_v19  ;;  %3517 = vmatpush3.bf16.msra.mxu1 %v3771_v8 }
 0x94a   :  { %3518 = vmatprep.subr.bf16.mxu1 %v3772_v0 }
 0x94c   :  { %3499 = vmatpush3.bf16.msra.mxu0 %v3762_v19 }
 0x94d   :  { %3519 = vmatpush3.bf16.msra.mxu1 %v3772_v0 }
 0x94f   :  { %3501 = vmatmul.mubr.bf16.vlgmr.msra.gmra.mrb[36].mxu0 %v1865_v23 }
 0x9e1   :  { %v3208_v26 = vpop.f32.mrb[20].mxu0 }
 0x9e2   :  { %v3236_v28 = vpop.f32.mrb[20].mxu1  ;;  %v3209_v30 = vpop.f32.mrb[21].mxu0 }
 0x9e3   :  { %v3210_v31 = vadd.f32 %v3209_v30, %v3208_v26  ;;  %v3237_v32 = vpop.f32.mrb[21].mxu1  ;;  %v3211_v34 = vpop.f32.mrb[22].mxu0 }
 0x9e4   :  { %v3238_v36 = vadd.f32 %v3237_v32, %v3236_v28  ;;  %v3239_v37 = vpop.f32.mrb[22].mxu1  ;;  %v3212_v5 = vpop.f32.mrb[23].mxu0 }
 0x9e5   :  { %v2484_v38 = vadd.f32 %v3210_v31, %v3037_v29  ;;  %v3213_v39 = vadd.f32 %v3212_v5, %v3211_v34  ;;  %v3240_v40 = vpop.f32.mrb[23].mxu1 }
 0x9e6   :  { %v3241_v41 = vadd.f32 %v3240_v40, %v3239_v37 }
 0x9e7   :  { %v2533_v43 = vadd.f32 %v3238_v36, %v2484_v38  ;;  %v2487_v44 = vadd.f32 %v3213_v39, %v3037_v29 }
 0x9e9   :  { %v2536_v46 = vadd.f32 %v3241_v41, %v2487_v44  ;;  %v3214_v47 = vpop.f32.mrb[24].mxu0 }
 0x9ea   :  { %v3242_v48 = vpop.f32.mrb[24].mxu1  ;;  %v3215_v49 = vpop.f32.mrb[25].mxu0 }
 0x9eb   :  { %v3216_v51 = vadd.f32 %v3215_v49, %v3214_v47  ;;  %v3243_v52 = vpop.f32.mrb[25].mxu1  ;;  %v3217_v53 = vpop.f32.mrb[26].mxu0 }
 0x9ec   :  { %v3244_v54 = vadd.f32 %v3243_v52, %v3242_v48  ;;  %v3245_v55 = vpop.f32.mrb[26].mxu1  ;;  %v3218_v56 = vpop.f32.mrb[27].mxu0  ;;  %v3110_v48 = vld [vmem:[#allocation11] ss:$0 sm:$0xff] }
 0x9ed   :  { %v2492_v57 = vadd.f32 %v3216_v51, %v3037_v29  ;;  %v3219_v59 = vadd.f32 %v3218_v56, %v3217_v53  ;;  %v3246_v60 = vpop.f32.mrb[27].mxu1  ;;  %v2703_v49 = vmul.f32 %v3110_v48, %v4338_v25  ;;  %v2701_v52 = vmul.f32 %v3110_v48, %v4343_v27 }
 0x9ee   :  { %v3247_v61 = vadd.f32 %v3246_v60, %v3245_v55  ;;  %v2704_v55 = vmul.f32 %v3110_v48, %v4347_v33  ;;  %v2702_v60 = vmul.f32 %v3110_v48, %v4336_v18 }
 0x9ef   :  { %v2541_v1 = vadd.f32 %v3244_v54, %v2492_v57  ;;  %v2495_v6 = vadd.f32 %v3219_v59, %v3037_v29 }
 0x9f1   :  { %v2544_v7 = vadd.f32 %v3247_v61, %v2495_v6 }
 0xa01   :  { %v3264_v10 = vpop.f32.mrb[28].mxu0 }
 0xa02   :  { %v3292_v2 = vpop.f32.mrb[28].mxu1  ;;  %v3265_v12 = vpop.f32.mrb[29].mxu0 }
 0xa03   :  { %v3266_v13 = vadd.f32 %v3265_v12, %v3264_v10  ;;  %v3293_v14 = vpop.f32.mrb[29].mxu1  ;;  %v3267_v16 = vpop.f32.mrb[30].mxu0 }
 0xa04   :  { %v3294_v17 = vadd.f32 %v3293_v14, %v3292_v2  ;;  %v3295_v19 = vpop.f32.mrb[30].mxu1  ;;  %v3268_v21 = vpop.f32.mrb[31].mxu0 }
 0xa05   :  { %v2582_v22 = vadd.f32 %v3266_v13, %v2533_v43  ;;  %v3269_v23 = vadd.f32 %v3268_v21, %v3267_v16  ;;  %v3296_v3 = vpop.f32.mrb[31].mxu1 }
 0xa06   :  { %v3297_v24 = vadd.f32 %v3296_v3, %v3295_v19 }
 0xa07   :  { %v2585_v26 = vadd.f32 %v3269_v23, %v2536_v46  ;;  %v2631_v28 = vadd.f32 %v3294_v17, %v2582_v22 }
 0xa09   :  { %v3270_v29 = vpop.f32.mrb[32].mxu0  ;;  %v2634_v30 = vadd.f32 %v3297_v24, %v2585_v26 }
 0xa0a   :  { %v3298_v4 = vpop.f32.mrb[32].mxu1  ;;  %v3271_v31 = vpop.f32.mrb[33].mxu0 }
 0xa0b   :  { %v3272_v32 = vadd.f32 %v3271_v31, %v3270_v29  ;;  %v3299_v34 = vpop.f32.mrb[33].mxu1  ;;  %v3273_v36 = vpop.f32.mrb[34].mxu0 }
 0xa0c   :  { %v3300_v37 = vadd.f32 %v3299_v34, %v3298_v4  ;;  %v3301_v5 = vpop.f32.mrb[34].mxu1  ;;  %v3274_v38 = vpop.f32.mrb[35].mxu0 }
 0xa0d   :  { %v2590_v39 = vadd.f32 %v3272_v32, %v2541_v1  ;;  %v3275_v40 = vadd.f32 %v3274_v38, %v3273_v36  ;;  %v3302_v41 = vpop.f32.mrb[35].mxu1 }
 0xa0e   :  { %v3303_v42 = vadd.f32 %v3302_v41, %v3301_v5 }
 0xa0f   :  { %v2593_v43 = vadd.f32 %v3275_v40, %v2544_v7  ;;  %v2639_v44 = vadd.f32 %v3300_v37, %v2590_v39 }
 0xa11   :  { %v2642_v47 = vadd.f32 %v3303_v42, %v2593_v43 }
 0xa22   :  { %v3502_v46 = vpop.f32.mrb[36].mxu0 }
 0xa23   :  { %v2688_v50 = vadd.f32 %v3502_v46, %v2639_v44  ;;  %v2679_v51 = vpop.f32.mrb[37].mxu0 }
 0xa24   :  { %v2680_v53 = vadd.f32 %v2679_v51, %v2631_v28  ;;  %v3503_v54 = vpop.f32.mrb[38].mxu0 }
 0xa25   :  { %v2707_v56 = vadd.f32 %v2703_v49, %v2688_v50  ;;  %v2691_v57 = vadd.f32 %v3503_v54, %v2642_v47  ;;  %v2682_v59 = vpop.f32.mrb[39].mxu0 }
 0xa26   :  { %v2705_v61 = vadd.f32 %v2701_v52, %v2680_v53  ;;  %v2683_v62 = vadd.f32 %v2682_v59, %v2634_v30 }
 0xa27   :  { %v2715_v1 = vmul.f32 0.2, %v2707_v56  ;;  %v2708_v6 = vadd.f32 %v2704_v55, %v2691_v57  ;;  %vm2711_vm14 = vcmp.ge.f32.partialorder %v2707_v56, 0.0 }
 0xa28   :  { %v2713_v7 = vmul.f32 0.2, %v2705_v61  ;;  %v2706_v25 = vadd.f32 %v2702_v60, %v2683_v62  ;;  %vm2709_vm15 = vcmp.ge.f32.partialorder %v2705_v61, 0.0 }
 0xa29   :  { %vm2712_vm0 = vcmp.ge.f32.partialorder %v2708_v6, 0.0  ;;  %v2716_v8 = vmul.f32 0.2, %v2708_v6  ;;  %v2719_v0 = vsel %vm2711_vm14, %v2707_v56, %v2715_v1 }
 0xa2a   :  { %vm2710_vm1 = vcmp.ge.f32.partialorder %v2706_v25, 0.0  ;;  %v2714_v27 = vmul.f32 0.2, %v2706_v25  ;;  %v2717_v33 = vsel %vm2709_vm15, %v2705_v61, %v2713_v7  ;;  %v2776_v61 = vrot.slane %v4390_v15, %v4363_v35 }
 0xa2b   :  { %v2720_v10 = vsel %vm2712_vm0, %v2708_v6, %v2716_v8  ;;  %v2772_v6 = vrot.slane %v1437_v9, %v4363_v35  ;;  %v2790_v8 = vrot.slane %v4396_v20, %v4363_v35 }
 0xa2c   :  { %v2728_v2 = vadd.f32 %v2720_v10, %v2719_v0  ;;  %v2718_v12 = vsel %vm2710_vm1, %v2706_v25, %v2714_v27 }
 0xa2d   :  { %v2721_v13 = vadd.f32 %v2718_v12, %v2717_v33 }
 0xa2e   :  { %v2729_v14 = vrot.slane %v2728_v2, 4 }
 0xa2f   :  { %v2722_v18 = vrot.slane %v2721_v13, 4 }
 0xa30   :  { %v2730_v16 = vadd.f32 %v2729_v14, %v2728_v2 }
 0xa31   :  { %v2723_v17 = vadd.f32 %v2722_v18, %v2721_v13  ;;  %v3111_v18 = vld [vmem:[#allocation16] ss:$0 sm:$0xff] }
 0xa32   :  { %v2731_v19 = vrot.slane %v2730_v16, 2 }
 0xa33   :  { %v2724_v21 = vrot.slane %v2723_v17, 2 }
 0xa34   :  { %v2732_v22 = vadd.f32 %v2731_v19, %v2730_v16 }
 0xa35   :  { %v2725_v23 = vadd.f32 %v2724_v21, %v2723_v17 }
 0xa36   :  { %v2733_v3 = vrot.slane %v2732_v22, 1 }
 0xa37   :  { %v2726_v24 = vrot.slane %v2725_v23, 1 }
 0xa38   :  { %v2734_v26 = vadd.f32 %v2733_v3, %v2732_v22 }
 0xa39   :  { %v2727_v28 = vadd.f32 %v2726_v24, %v2725_v23 }
 0xa3a   :  { %v2736_v29 = vmul.f32 0.0625, %v2734_v26 }
 0xa3b   :  { %v2735_v30 = vmul.f32 0.0625, %v2727_v28 }
 0xa3c   :  { %v2739_v4 = vsub.f32 %v2719_v0, %v2736_v29  ;;  %v2740_v31 = vsub.f32 %v2720_v10, %v2736_v29  ;;  %v2786_v10 = vrot.slane %v1460_v11, %v4363_v35 }
 0xa3d   :  { %v2737_v32 = vsub.f32 %v2717_v33, %v2735_v30  ;;  %v2738_v34 = vsub.f32 %v2718_v12, %v2735_v30 }
 0xa3e   :  { %v2743_v36 = vmul.f32 %v2739_v4, %v2739_v4  ;;  %v2744_v37 = vmul.f32 %v2740_v31, %v2740_v31 }
 0xa3f   :  { %v2741_v5 = vmul.f32 %v2737_v32, %v2737_v32  ;;  %v2742_v38 = vmul.f32 %v2738_v34, %v2738_v34 }
 0xa40   :  { %v2752_v39 = vadd.f32 %v2744_v37, %v2743_v36 }
 0xa41   :  { %v2745_v40 = vadd.f32 %v2742_v38, %v2741_v5 }
 0xa42   :  { %v2753_v41 = vrot.slane %v2752_v39, 4 }
 0xa43   :  { %v2746_v42 = vrot.slane %v2745_v40, 4 }
 0xa44   :  { %v2754_v43 = vadd.f32 %v2753_v41, %v2752_v39 }
 0xa45   :  { %v2747_v44 = vadd.f32 %v2746_v42, %v2745_v40 }
 0xa46   :  { %v2755_v47 = vrot.slane %v2754_v43, 2 }
 0xa47   :  { %v2748_v48 = vrot.slane %v2747_v44, 2 }
 0xa48   :  { %v2756_v46 = vadd.f32 %v2755_v47, %v2754_v43 }
 0xa49   :  { %v2749_v49 = vadd.f32 %v2748_v48, %v2747_v44 }
 0xa4a   :  { %v2757_v50 = vrot.slane %v2756_v46, 1 }
 0xa4b   :  { %v2750_v51 = vrot.slane %v2749_v49, 1 }
 0xa4c   :  { %v2758_v52 = vadd.f32 %v2757_v50, %v2756_v46 }
 0xa4d   :  { %v2751_v53 = vadd.f32 %v2750_v51, %v2749_v49 }
 0xa4e   :  { %v2760_v54 = vmul.f32 0.0625, %v2758_v52 }
 0xa4f   :  { %v2759_v55 = vmul.f32 0.0625, %v2751_v53 }
 0xa50   :  { %v2762_v56 = vadd.f32 1e-05, %v2760_v54 }
 0xa51   :  { %v2761_v57 = vadd.f32 1e-05, %v2759_v55 }
 0xa52   :  { %3779 = vrsqrt.f32 %v2762_v56 }
 0xa53   :  { %3781 = vrsqrt.f32 %v2761_v57 }
 0xa5c   :  { %v3780_v59 = vpop.eup %3779 }
 0xa5d   :  { %v3782_v60 = vpop.eup %3781  ;;  %v2767_v62 = vmul.f32 %v3780_v59, %v2739_v4  ;;  %v2768_v1 = vmul.f32 %v3780_v59, %v2740_v31 }
 0xa5e   :  { %v2765_v7 = vmul.f32 %v3782_v60, %v2737_v32  ;;  %v2766_v25 = vmul.f32 %v3782_v60, %v2738_v34 }
 0xa5f   :  { %v2782_v27 = vmul.f32 %v2776_v61, %v2768_v1  ;;  %v2781_v0 = vmul.f32 %v2776_v61, %v2767_v62 }
 0xa60   :  { %v2779_v15 = vmul.f32 %v2772_v6, %v2765_v7  ;;  %v2780_v33 = vmul.f32 %v2772_v6, %v2766_v25 }
 0xa61   :  { %v2795_v2 = vadd.f32 %v2790_v8, %v2781_v0  ;;  %v2796_v12 = vadd.f32 %v2790_v8, %v2782_v27 }
 0xa62   :  { %v2793_v13 = vadd.f32 %v2786_v10, %v2779_v15  ;;  %v2794_v14 = vadd.f32 %v2786_v10, %v2780_v33 }
 0xa63   :  { %v2798_v58 = vpack.c.bf16 %v2796_v12, %v2795_v2 }
 0xa64   :  { %v2797_v9 = vpack.c.bf16 %v2794_v14, %v2793_v13 }
 0xa66   :  { %3520 = vmatprep.mubr.bf16.mxu1 %v2797_v9 }
 0xa67   :  { %3521 = vmatmul.mubr.bf16.vlgmr.msra.gmra.mrb[36].mxu1 %v2798_v58 }
 0xb3a   :  { %v3522_v16 = vpop.f32.mrb[36].mxu1 }
 0xb3b   :  { %v2913_v20 = vadd.f32 %v3522_v16, %v3111_v18  ;;  %v2904_v17 = vpop.f32.mrb[37].mxu1 }
 0xb3c   :  { %v2905_v19 = vadd.f32 %v3111_v18, %v2904_v17  ;;  %v3523_v21 = vpop.f32.mrb[38].mxu1 }
 0xb3d   :  { %2921 = vst [vmem:[%s4466_s13 + $0x10] sm:$0xff] %v2913_v20  ;;  %v2916_v35 = vadd.f32 %v3523_v21, %v3111_v18  ;;  %v2907_v45 = vpop.f32.mrb[39].mxu1 }
 0xb3e   :  { %2919 = vst [vmem:[%s4466_s13] sm:$0xff] %v2905_v19  ;;  %v2908_v63 = vadd.f32 %v3111_v18, %v2907_v45 }
 0xb3f   :  { %2922 = vst [vmem:[%s4466_s13 + $0x18] sm:$0xff] %v2916_v35 }
 0xb40   :  { %2920 = vst [vmem:[%s4466_s13 + $0x8] sm:$0xff] %v2908_v63 }
 0xb41   :  { %2927 = vsyncpa [#allocation4], 1 }
 0xb42   :  { %2928 = vsyncpa [#allocation6], 1 }
 0xb43   :  { %2929 = vsyncpa [#allocation9], 1 }
 0xb44   :  { %2930 = vsyncpa [#allocation12], 1 }
 0xb45   :  { %2931 = vsyncpa [#allocation15], 1 }

</bundles_post_ra>
